<compile_context>
chip_gen: v7x
topology: tpu7x:2x2x1
jax: 0.10.0
libtpu: 0.0.40
codegen_flags: <defaults>
</compile_context>

<pallas_src>
import math
import jax
import jax.numpy as jnp
from jax.experimental import pallas as pl
from jax.experimental.pallas import tpu as pltpu

# ---------------------------------------------------------------------------
# Synthetic "config" (small shapes, consistent with a BertLayer stack)
# ---------------------------------------------------------------------------
NUM_LAYERS = 2
BATCH = 2
SEQ = 8
HIDDEN = 32
NUM_HEADS = 2
HEAD_DIM = HIDDEN // NUM_HEADS
INTERMEDIATE = 64
LN_EPS = 1e-12


# ---------------------------------------------------------------------------
# In-kernel helpers (kept in f32: v5e has no bf16 VPU/EUP path)
# ---------------------------------------------------------------------------
def _layer_norm(x, gamma, beta):
    mean = jnp.mean(x, axis=-1, keepdims=True)
    var = jnp.mean((x - mean) * (x - mean), axis=-1, keepdims=True)
    inv = jax.lax.rsqrt(var + LN_EPS)
    return (x - mean) * inv * gamma + beta


def _gelu(x):
    # TODO(synk): HF BertIntermediate defaults to the exact erf-based gelu; tanh approx here.
    c = math.sqrt(2.0 / math.pi)
    return 0.5 * x * (1.0 + jnp.tanh(c * (x + 0.044715 * x * x * x)))


# ---------------------------------------------------------------------------
# BertLayer kernel (whole layer for one batch tile)
# ---------------------------------------------------------------------------
def _make_bert_layer_kernel(nheads, head_dim, emit_attn):
    scale = 1.0 / math.sqrt(head_dim)

    def kernel(x_ref, mask_ref, hm_ref,
               wqkv_ref, bqkv_ref, wao_ref, bao_ref, g1_ref, b1_ref,
               wi_ref, bi_ref, wo_ref, bo_ref, g2_ref, b2_ref,
               out_ref, *rest):
        if emit_attn:
            attn_ref, ctx_ref = rest
        else:
            (ctx_ref,) = rest

        bt, s, hsz = x_ref.shape
        m = bt * s
        x = x_ref[...].reshape(m, hsz)          # fold batch into the MXU M dim (f32)
        mask = mask_ref[...]                    # (bt, 1, s) additive attention mask

        # Fused Q/K/V projection: one (m, 3H) matmul, bf16 operands, f32 accumulation.
        qkv = jnp.dot(x.astype(jnp.bfloat16), wqkv_ref[...],
                      preferred_element_type=jnp.float32) + bqkv_ref[...]

        for h in range(nheads):                 # static (unrolled) head loop, nheads small
            lo = h * head_dim
            # TODO(synk): at production head_dim=64 these lane slices start at
            # non-128-aligned offsets; a single up-front relayout to (bt, nheads, s, hd)
            # + one 'bhqd,bhkd->bhqk' contraction would remove per-head shuffles.
            qh = qkv[:, 0 * hsz + lo:0 * hsz + lo + head_dim].reshape(bt, s, head_dim)
            kh = qkv[:, 1 * hsz + lo:1 * hsz + lo + head_dim].reshape(bt, s, head_dim)
            vh = qkv[:, 2 * hsz + lo:2 * hsz + lo + head_dim].reshape(bt, s, head_dim)

            # Batched contraction over the batch tile; contracts head_dim directly
            # (no explicit transpose through the XLU).
            scores = jnp.einsum('bqd,bkd->bqk',
                                qh.astype(jnp.bfloat16), kh.astype(jnp.bfloat16),
                                preferred_element_type=jnp.float32) * scale
            scores = scores + mask              # broadcast over query rows
            scores = scores - jnp.max(scores, axis=-1, keepdims=True)
            e = jnp.exp(scores)
            denom = jnp.sum(e, axis=-1, keepdims=True)
            probs = e * pl.reciprocal(denom, approx=True)   # divide on the EUP

            hm = hm_ref[h]                      # per-head mask scalar from SMEM
            if emit_attn:
                # HF records the head-masked probabilities.
                probs = probs * hm
                attn_ref[:, h] = probs.astype(attn_ref.dtype)
                ctx_h = jnp.einsum('bqk,bkd->bqd',
                                   probs.astype(jnp.bfloat16), vh.astype(jnp.bfloat16),
                                   preferred_element_type=jnp.float32)
            else:
                ctx_h = jnp.einsum('bqk,bkd->bqd',
                                   probs.astype(jnp.bfloat16), vh.astype(jnp.bfloat16),
                                   preferred_element_type=jnp.float32)
                # Apply the per-head mask on the small (m, head_dim) context
                # instead of the (m, s) probs: ~s/head_dim less VALU work.
                ctx_h = ctx_h * hm
            # Concatenate heads by writing column slices of the VMEM scratch.
            ctx_ref[:, lo:lo + head_dim] = ctx_h.reshape(m, head_dim)

        # One full-K attention-output matmul (replaces nheads K=head_dim partial matmuls
        # plus full-matrix accumulator adds).
        attn_proj = jnp.dot(ctx_ref[...].astype(jnp.bfloat16), wao_ref[...],
                            preferred_element_type=jnp.float32) + bao_ref[...]
        h1 = _layer_norm(attn_proj + x, g1_ref[...], b1_ref[...])

        # Intermediate GELU MLP + output projection + residual + LayerNorm.
        inter = _gelu(jnp.dot(h1.astype(jnp.bfloat16), wi_ref[...],
                              preferred_element_type=jnp.float32) + bi_ref[...])
        mlp = jnp.dot(inter.astype(jnp.bfloat16), wo_ref[...],
                      preferred_element_type=jnp.float32) + bo_ref[...]
        out_ref[...] = _layer_norm(mlp + h1, g2_ref[...], b2_ref[...]) \
            .astype(out_ref.dtype).reshape(bt, s, hsz)

    return kernel


def _batch_tile(btot, seq, max_rows=512):
    """Rows per grid step: cap activation rows at ~max_rows (bounds in-kernel
    temporaries like qkv / inter to a few MB at production shapes) while keeping
    >=2 grid steps whenever the batch allows it (v7x megacore shards the
    'parallel' axis across its two TensorCores)."""
    bt = btot
    while bt % 2 == 0 and bt * seq > max_rows:
        bt //= 2
    if bt == btot and btot % 2 == 0:
        bt = btot // 2
    return bt


def _vmem_limit_bytes(BT, S, H, I, emit_attn):
    """Explicit scoped-VMEM budget: bf16 weights + f32 biases/LN params (double-
    buffered by the pipeline), activation tiles, ctx scratch and temporaries,
    clamped to a v7x-safe budget."""
    f32, bf16 = 4, 2
    m = BT * S
    weights = (H * 3 * H + H * H + H * I + I * H) * bf16        # matmul weights (bf16)
    weights += (3 * H + 6 * H + I) * f32                        # biases + LN params
    tiles_in = (BT * S * H + BT * S) * f32                      # x tile + mask tile
    tiles_out = BT * S * H * f32
    if emit_attn:
        tiles_out += BT * NUM_HEADS * S * S * f32
    scratch = m * H * f32                                       # ctx scratch
    temps = m * (3 * H + I) * f32 + 3 * BT * S * S * f32        # qkv, inter, scores/probs
    total = 2 * (weights + tiles_in + tiles_out) + scratch + 2 * temps
    return int(min(max(total, 32 << 20), 48 << 20))


def bert_layer_pallas(x, attn_mask, head_mask_layer, p, output_attentions):
    """x: (B, S, H); attn_mask: (B, 1, S) additive; head_mask_layer: (NUM_HEADS,)."""
    B, S, H = x.shape
    I = p["wi"].shape[1]
    BT = _batch_tile(B, S)
    grid = (B // BT,)

    def rep(shape):
        # Constant-index (weight) block: same tile every grid step.
        # TODO(synk): single-buffer these (pipeline_mode=pl.Buffered(1)) at production
        # sizes to halve the resident weight VMEM on v7x.
        n = len(shape)
        return pl.BlockSpec(shape, lambda b, _n=n: (0,) * _n)

    in_specs = [
        pl.BlockSpec((BT, S, H), lambda b: (b, 0, 0)),            # hidden-states tile
        pl.BlockSpec((BT, 1, S), lambda b: (b, 0, 0)),            # additive attention mask
        pl.BlockSpec(memory_space=pltpu.MemorySpace.SMEM),        # head mask (scalars)
        rep((H, 3 * H)), rep((1, 3 * H)),                         # fused QKV (bf16 W)
        rep((H, H)), rep((1, H)),                                 # attention output proj
        rep((1, H)), rep((1, H)),                                 # LN1 gamma/beta
        rep((H, I)), rep((1, I)),                                 # intermediate
        rep((I, H)), rep((1, H)),                                 # output proj
        rep((1, H)), rep((1, H)),                                 # LN2 gamma/beta
    ]
    out_specs = [pl.BlockSpec((BT, S, H), lambda b: (b, 0, 0))]
    out_shape = [jax.ShapeDtypeStruct((B, S, H), x.dtype)]
    if output_attentions:
        out_specs.append(pl.BlockSpec((BT, NUM_HEADS, S, S), lambda b: (b, 0, 0, 0)))
        out_shape.append(jax.ShapeDtypeStruct((B, NUM_HEADS, S, S), x.dtype))

    kernel = _make_bert_layer_kernel(NUM_HEADS, HEAD_DIM, output_attentions)
    outs = pl.pallas_call(
        kernel,
        grid=grid,
        in_specs=in_specs,
        out_specs=out_specs,
        out_shape=out_shape,
        scratch_shapes=[pltpu.VMEM((BT * S, H), jnp.float32)],    # concat-heads ctx
        compiler_params=pltpu.CompilerParams(
            dimension_semantics=("parallel",),
            vmem_limit_bytes=_vmem_limit_bytes(BT, S, H, I, output_attentions)),
    )(x, attn_mask, head_mask_layer,
      p["wqkv"], p["bqkv"], p["wao"], p["bao"], p["g1"], p["b1"],
      p["wi"], p["bi"], p["wo"], p["bo"], p["g2"], p["b2"])
    # TODO(synk): cross-pallas_call DMA future to prefetch the next layer's weights
    # (hides the per-layer weight re-stream when the batch tile is small).
    if output_attentions:
        return outs[0], outs[1]
    return outs[0], None


# ---------------------------------------------------------------------------
# TMix interpolation kernel (blocked, row-tiled; pure HBM-bandwidth)
# ---------------------------------------------------------------------------
def _mix_kernel(l_ref, x_ref, y_ref, o_ref):
    lam = l_ref[0]                                    # scalar from SMEM
    o_ref[...] = lam * x_ref[...] + (1.0 - lam) * y_ref[...]


def mix_pallas(x, y, l):
    """Elementwise TMix interpolation: l*x + (1-l)*y."""
    B, S, H = x.shape
    rows = B * S
    x2 = x.reshape(rows, H)
    y2 = y.reshape(rows, H)
    l1 = jnp.asarray(l, jnp.float32).reshape(1)

    # Largest row tile (<= 2048) that divides rows: mem-bound kernel near HBM roofline.
    tile = rows
    for cand in (2048, 1024, 512, 256, 128, 64, 32, 16, 8):
        if rows >= cand and rows % cand == 0:
            tile = cand
            break
    grid = (rows // tile,)
    # TODO(synk): fuse this interpolation into the preceding BertLayer kernel epilogue
    # to avoid an extra read+read+write of the hidden state through HBM.

    out = pl.pallas_call(
        _mix_kernel,
        grid=grid,
        in_specs=[pl.BlockSpec(memory_space=pltpu.MemorySpace.SMEM),
                  pl.BlockSpec((tile, H), lambda i: (i, 0)),
                  pl.BlockSpec((tile, H), lambda i: (i, 0))],
        out_specs=pl.BlockSpec((tile, H), lambda i: (i, 0)),
        out_shape=jax.ShapeDtypeStruct((rows, H), x.dtype),
        compiler_params=pltpu.CompilerParams(dimension_semantics=("parallel",)),
    )(l1, x2, y2)
    return out.reshape(B, S, H)


# ---------------------------------------------------------------------------
# BertEncoder4Mix forward (mirrors the PyTorch control flow exactly)
# ---------------------------------------------------------------------------
def bert_encoder4mix(params, hidden_states, hidden_states2=None, l=None,
                     mix_layer=1000, attention_mask=None, attention_mask2=None,
                     head_mask=None, output_attentions=False,
                     output_hidden_states=False):
    B = hidden_states.shape[0]
    all_hidden_states = ()
    all_attentions = ()
    if mix_layer == -1:
        if hidden_states2 is not None:
            hidden_states = mix_pallas(hidden_states, hidden_states2, l)
    for i, p in enumerate(params):
        if i <= mix_layer:
            if output_hidden_states:
                all_hidden_states = all_hidden_states + (hidden_states,)
            if hidden_states2 is not None:
                # Stack both streams along batch: one kernel launch + one weight DMA
                # per layer (weights are shared between the two streams).
                xs = jnp.concatenate([hidden_states, hidden_states2], axis=0)
                ms = jnp.concatenate([attention_mask, attention_mask2], axis=0)
                out, attn = bert_layer_pallas(xs, ms, head_mask[i], p, output_attentions)
                hidden_states, hidden_states2 = out[:B], out[B:]
                if output_attentions:
                    all_attentions = all_attentions + (attn[:B],)
            else:
                hidden_states, attn = bert_layer_pallas(
                    hidden_states, attention_mask, head_mask[i], p, output_attentions)
                if output_attentions:
                    all_attentions = all_attentions + (attn,)
        if i == mix_layer:
            if hidden_states2 is not None:
                hidden_states = mix_pallas(hidden_states, hidden_states2, l)
        if i > mix_layer:
            if output_hidden_states:
                all_hidden_states = all_hidden_states + (hidden_states,)
            hidden_states, attn = bert_layer_pallas(
                hidden_states, attention_mask, head_mask[i], p, output_attentions)
            if output_attentions:
                all_attentions = all_attentions + (attn,)
    if output_hidden_states:
        all_hidden_states = all_hidden_states + (hidden_states,)
    outputs = (hidden_states,)
    if output_hidden_states:
        outputs = outputs + (all_hidden_states,)
    if output_attentions:
        outputs = outputs + (all_attentions,)
    return outputs


# ---------------------------------------------------------------------------
# Deterministic parameter init (synthetic; shapes follow BertLayer)
# ---------------------------------------------------------------------------
def init_params(key, num_layers, H, I):
    # Matmul weights stored in bf16 (MXU operands); biases/LN params stay f32.
    params = []
    for i in range(num_layers):
        ks = jax.random.split(jax.random.fold_in(key, i), 6)
        w = lambda k, shape: (0.02 * jax.random.normal(k, shape)).astype(jnp.bfloat16)
        z = lambda n: jnp.zeros((1, n), jnp.float32)
        o = lambda n: jnp.ones((1, n), jnp.float32)
        wq, wk, wv = w(ks[0], (H, H)), w(ks[1], (H, H)), w(ks[2], (H, H))
        params.append(dict(
            wqkv=jnp.concatenate([wq, wk, wv], axis=1),   # fused (H, 3H) bf16 operand
            bqkv=jnp.zeros((1, 3 * H), jnp.float32),
            wao=w(ks[3], (H, H)), bao=z(H),
            g1=o(H), b1=z(H),
            wi=w(ks[4], (H, I)), bi=z(I),
            wo=w(ks[5], (I, H)), bo=z(H),
            g2=o(H), b2=z(H),
        ))
    return params


# ---------------------------------------------------------------------------
# Driver
# ---------------------------------------------------------------------------
if __name__ == "__main__":
    key = jax.random.PRNGKey(0)
    k1, k2, k3 = jax.random.split(key, 3)

    params = init_params(k1, NUM_LAYERS, HIDDEN, INTERMEDIATE)

    hidden_states = jax.random.normal(k2, (BATCH, SEQ, HIDDEN), jnp.float32)
    hidden_states2 = jax.random.normal(k3, (BATCH, SEQ, HIDDEN), jnp.float32)

    # Additive attention masks (0 = attend), shaped (B, 1, S).
    attention_mask = jnp.zeros((BATCH, 1, SEQ), jnp.float32)
    attention_mask2 = jnp.zeros((BATCH, 1, SEQ), jnp.float32)
    # Head mask: ones per layer, shape (num_layers, num_heads); read as SMEM scalars.
    head_mask = jnp.ones((NUM_LAYERS, NUM_HEADS), jnp.float32)
    # Mix coefficient l.
    l = jnp.array([0.7], jnp.float32)

    outputs = bert_encoder4mix(
        params, hidden_states,
        hidden_states2=hidden_states2, l=l, mix_layer=0,
        attention_mask=attention_mask, attention_mask2=attention_mask2,
        head_mask=head_mask,
        output_attentions=True, output_hidden_states=True,
    )

    final_hidden = jax.block_until_ready(outputs[0])
    for hs in outputs[1]:
        jax.block_until_ready(hs)
    for at in outputs[2]:
        jax.block_until_ready(at)

    assert final_hidden.shape == (BATCH, SEQ, HIDDEN)
    assert outputs[2][0].shape == (BATCH, NUM_HEADS, SEQ, SEQ)
    assert bool(jnp.all(jnp.isfinite(final_hidden)))
    print("KERNEL_OK")
</pallas_src>

<mosaic_0001>
module attributes {stable_mosaic.version = 11 : i64} {
  func.func @kernel(%arg0: i32, %arg1: memref<2x8x32xf32, #tpu.memory_space<vmem>>, %arg2: memref<2x1x8xf32, #tpu.memory_space<vmem>>, %arg3: memref<2xf32, #tpu.memory_space<smem>>, %arg4: memref<32x96xbf16, #tpu.memory_space<vmem>>, %arg5: memref<1x96xf32, #tpu.memory_space<vmem>>, %arg6: memref<32x32xbf16, #tpu.memory_space<vmem>>, %arg7: memref<1x32xf32, #tpu.memory_space<vmem>>, %arg8: memref<1x32xf32, #tpu.memory_space<vmem>>, %arg9: memref<1x32xf32, #tpu.memory_space<vmem>>, %arg10: memref<32x64xbf16, #tpu.memory_space<vmem>>, %arg11: memref<1x64xf32, #tpu.memory_space<vmem>>, %arg12: memref<64x32xbf16, #tpu.memory_space<vmem>>, %arg13: memref<1x32xf32, #tpu.memory_space<vmem>>, %arg14: memref<1x32xf32, #tpu.memory_space<vmem>>, %arg15: memref<1x32xf32, #tpu.memory_space<vmem>>, %arg16: memref<2x8x32xf32, #tpu.memory_space<vmem>>, %arg17: memref<2x2x8x8xf32, #tpu.memory_space<vmem>>, %arg18: memref<16x32xf32, #tpu.memory_space<vmem>>) attributes {dimension_semantics = [#tpu.dimension_semantics<parallel>], iteration_bounds = array<i64: 2>, scalar_prefetch = 0 : i64, scratch_operands = 1 : i64, tpu.core_type = #tpu.core_type<tc>, window_params = [{transform_indices = @transform_0, window_bounds = array<i64: 2, 8, 32>}, {transform_indices = @transform_1, window_bounds = array<i64: 2, 1, 8>}, {transform_indices = @transform_2, window_bounds = array<i64: 2>}, {pipeline_mode = #tpu.pipeline_mode<synchronous>, transform_indices = @transform_3, window_bounds = array<i64: 32, 96>}, {pipeline_mode = #tpu.pipeline_mode<synchronous>, transform_indices = @transform_4, window_bounds = array<i64: 1, 96>}, {pipeline_mode = #tpu.pipeline_mode<synchronous>, transform_indices = @transform_5, window_bounds = array<i64: 32, 32>}, {pipeline_mode = #tpu.pipeline_mode<synchronous>, transform_indices = @transform_6, window_bounds = array<i64: 1, 32>}, {pipeline_mode = #tpu.pipeline_mode<synchronous>, transform_indices = @transform_7, window_bounds = array<i64: 1, 32>}, {pipeline_mode = #tpu.pipeline_mode<synchronous>, transform_indices = @transform_8, window_bounds = array<i64: 1, 32>}, {pipeline_mode = #tpu.pipeline_mode<synchronous>, transform_indices = @transform_9, window_bounds = array<i64: 32, 64>}, {pipeline_mode = #tpu.pipeline_mode<synchronous>, transform_indices = @transform_10, window_bounds = array<i64: 1, 64>}, {pipeline_mode = #tpu.pipeline_mode<synchronous>, transform_indices = @transform_11, window_bounds = array<i64: 64, 32>}, {pipeline_mode = #tpu.pipeline_mode<synchronous>, transform_indices = @transform_12, window_bounds = array<i64: 1, 32>}, {pipeline_mode = #tpu.pipeline_mode<synchronous>, transform_indices = @transform_13, window_bounds = array<i64: 1, 32>}, {pipeline_mode = #tpu.pipeline_mode<synchronous>, transform_indices = @transform_14, window_bounds = array<i64: 1, 32>}, {transform_indices = @transform_15, window_bounds = array<i64: 2, 8, 32>}, {transform_indices = @transform_16, window_bounds = array<i64: 2, 2, 8, 8>}]} {
    %c0 = arith.constant 0 : index
    %c0_0 = arith.constant 0 : index
    %c0_1 = arith.constant 0 : index
    %0 = vector.load %arg1[%c0, %c0_0, %c0_1] : memref<2x8x32xf32, #tpu.memory_space<vmem>>, vector<2x8x32xf32>
    %1 = vector.shape_cast %0 : vector<2x8x32xf32> to vector<16x32xf32>
    %c0_2 = arith.constant 0 : index
    %c0_3 = arith.constant 0 : index
    %c0_4 = arith.constant 0 : index
    %2 = vector.load %arg2[%c0_2, %c0_3, %c0_4] : memref<2x1x8xf32, #tpu.memory_space<vmem>>, vector<2x1x8xf32>
    %3 = arith.truncf %1 : vector<16x32xf32> to vector<16x32xbf16>
    %c0_5 = arith.constant 0 : index
    %c0_6 = arith.constant 0 : index
    %4 = vector.load %arg4[%c0_5, %c0_6] : memref<32x96xbf16, #tpu.memory_space<vmem>>, vector<32x96xbf16>
    %cst = arith.constant dense<0.000000e+00> : vector<16x96xf32>
    %5 = tpu.matmul %3, %4, %cst {dimension_numbers = #tpu.dot_dimension_numbers<[1], [0], [0], [1], [0, 0, 1, 1], [], []>} : vector<16x32xbf16>, vector<32x96xbf16>, vector<16x96xf32> -> vector<16x96xf32>
    %c0_7 = arith.constant 0 : index
    %c0_8 = arith.constant 0 : index
    %6 = vector.load %arg5[%c0_7, %c0_8] : memref<1x96xf32, #tpu.memory_space<vmem>>, vector<1x96xf32>
    %7 = vector.broadcast %6 : vector<1x96xf32> to vector<16x96xf32>
    %8 = arith.addf %5, %7 : vector<16x96xf32>
    %9 = vector.extract_strided_slice %8 {offsets = [0, 0], sizes = [16, 16], strides = [1, 1]} : vector<16x96xf32> to vector<16x16xf32>
    %10 = vector.shape_cast %9 : vector<16x16xf32> to vector<2x8x16xf32>
    %11 = vector.extract_strided_slice %8 {offsets = [0, 32], sizes = [16, 16], strides = [1, 1]} : vector<16x96xf32> to vector<16x16xf32>
    %12 = vector.shape_cast %11 : vector<16x16xf32> to vector<2x8x16xf32>
    %13 = vector.extract_strided_slice %8 {offsets = [0, 64], sizes = [16, 16], strides = [1, 1]} : vector<16x96xf32> to vector<16x16xf32>
    %14 = vector.shape_cast %13 : vector<16x16xf32> to vector<2x8x16xf32>
    %15 = arith.truncf %10 : vector<2x8x16xf32> to vector<2x8x16xbf16>
    %16 = arith.truncf %12 : vector<2x8x16xf32> to vector<2x8x16xbf16>
    "tpu.trace_start"() <{level = 10 : i32, message = "bqd,bkd->bqk"}> : () -> ()
    %cst_9 = arith.constant dense<0.000000e+00> : vector<2x8x8xf32>
    %17 = tpu.matmul %15, %16, %cst_9 {dimension_numbers = #tpu.dot_dimension_numbers<[2], [2], [1], [1], [0, 0, 0, 1, 1, 1], [0], [0]>} : vector<2x8x16xbf16>, vector<2x8x16xbf16>, vector<2x8x8xf32> -> vector<2x8x8xf32>
    "tpu.trace_stop"() : () -> ()
    %cst_10 = arith.constant 2.500000e-01 : f32
    %18 = vector.broadcast %cst_10 : f32 to vector<2x8x8xf32>
    %19 = arith.mulf %17, %18 : vector<2x8x8xf32>
    %20 = vector.broadcast %2 : vector<2x1x8xf32> to vector<2x8x8xf32>
    %21 = arith.addf %19, %20 : vector<2x8x8xf32>
    %cst_11 = arith.constant dense<0xFF800000> : vector<2x8xf32>
    %22 = vector.multi_reduction <maximumf>, %21, %cst_11 [2] : vector<2x8x8xf32> to vector<2x8xf32>
    %23 = vector.shape_cast %22 : vector<2x8xf32> to vector<2x8x1xf32>
    %24 = vector.broadcast %23 : vector<2x8x1xf32> to vector<2x8x8xf32>
    %25 = arith.subf %21, %24 : vector<2x8x8xf32>
    %26 = math.exp %25 : vector<2x8x8xf32>
    %cst_12 = arith.constant dense<0.000000e+00> : vector<2x8xf32>
    %27 = vector.multi_reduction <add>, %26, %cst_12 [2] : vector<2x8x8xf32> to vector<2x8xf32>
    %28 = vector.shape_cast %27 : vector<2x8xf32> to vector<2x8x1xf32>
    %29 = tpu.reciprocal %28 {approx = true} : vector<2x8x1xf32> -> vector<2x8x1xf32>
    %30 = vector.broadcast %29 : vector<2x8x1xf32> to vector<2x8x8xf32>
    %31 = arith.mulf %26, %30 : vector<2x8x8xf32>
    %c0_13 = arith.constant 0 : index
    %32 = memref.load %arg3[%c0_13] : memref<2xf32, #tpu.memory_space<smem>>
    %33 = vector.broadcast %32 : f32 to vector<2x8x8xf32>
    %34 = arith.mulf %31, %33 : vector<2x8x8xf32>
    %c0_14 = arith.constant 0 : index
    %c0_15 = arith.constant 0 : index
    %c0_16 = arith.constant 0 : index
    %c0_17 = arith.constant 0 : index
    %35 = vector.load %arg17[%c0_14, %c0_15, %c0_16, %c0_17] : memref<2x2x8x8xf32, #tpu.memory_space<vmem>>, vector<2x1x8x8xf32>
    %36 = vector.shape_cast %35 : vector<2x1x8x8xf32> to vector<2x8x8xf32>
    %37 = vector.shape_cast %34 : vector<2x8x8xf32> to vector<2x1x8x8xf32>
    tpu.vector_store %arg17[%c0_14, %c0_15, %c0_16, %c0_17], %37 {strides = array<i32>} : memref<2x2x8x8xf32, #tpu.memory_space<vmem>>, vector<2x1x8x8xf32>,
    %38 = arith.truncf %34 : vector<2x8x8xf32> to vector<2x8x8xbf16>
    %39 = arith.truncf %14 : vector<2x8x16xf32> to vector<2x8x16xbf16>
    "tpu.trace_start"() <{level = 10 : i32, message = "bqk,bkd->bqd"}> : () -> ()
    %cst_18 = arith.constant dense<0.000000e+00> : vector<2x8x16xf32>
    %40 = tpu.matmul %38, %39, %cst_18 {dimension_numbers = #tpu.dot_dimension_numbers<[2], [1], [1], [2], [0, 0, 0, 1, 1, 2], [0], [0]>} : vector<2x8x8xbf16>, vector<2x8x16xbf16>, vector<2x8x16xf32> -> vector<2x8x16xf32>
    "tpu.trace_stop"() : () -> ()
    %41 = vector.shape_cast %40 : vector<2x8x16xf32> to vector<16x16xf32>
    %c0_19 = arith.constant 0 : index
    %c0_20 = arith.constant 0 : index
    %42 = vector.load %arg18[%c0_19, %c0_20] : memref<16x32xf32, #tpu.memory_space<vmem>>, vector<16x16xf32>
    tpu.vector_store %arg18[%c0_19, %c0_20], %41 {strides = array<i32>} : memref<16x32xf32, #tpu.memory_space<vmem>>, vector<16x16xf32>,
    %43 = vector.extract_strided_slice %8 {offsets = [0, 16], sizes = [16, 16], strides = [1, 1]} : vector<16x96xf32> to vector<16x16xf32>
    %44 = vector.shape_cast %43 : vector<16x16xf32> to vector<2x8x16xf32>
    %45 = vector.extract_strided_slice %8 {offsets = [0, 48], sizes = [16, 16], strides = [1, 1]} : vector<16x96xf32> to vector<16x16xf32>
    %46 = vector.shape_cast %45 : vector<16x16xf32> to vector<2x8x16xf32>
    %47 = vector.extract_strided_slice %8 {offsets = [0, 80], sizes = [16, 16], strides = [1, 1]} : vector<16x96xf32> to vector<16x16xf32>
    %48 = vector.shape_cast %47 : vector<16x16xf32> to vector<2x8x16xf32>
    %49 = arith.truncf %44 : vector<2x8x16xf32> to vector<2x8x16xbf16>
    %50 = arith.truncf %46 : vector<2x8x16xf32> to vector<2x8x16xbf16>
    "tpu.trace_start"() <{level = 10 : i32, message = "bqd,bkd->bqk"}> : () -> ()
    %cst_21 = arith.constant dense<0.000000e+00> : vector<2x8x8xf32>
    %51 = tpu.matmul %49, %50, %cst_21 {dimension_numbers = #tpu.dot_dimension_numbers<[2], [2], [1], [1], [0, 0, 0, 1, 1, 1], [0], [0]>} : vector<2x8x16xbf16>, vector<2x8x16xbf16>, vector<2x8x8xf32> -> vector<2x8x8xf32>
    "tpu.trace_stop"() : () -> ()
    %cst_22 = arith.constant 2.500000e-01 : f32
    %52 = vector.broadcast %cst_22 : f32 to vector<2x8x8xf32>
    %53 = arith.mulf %51, %52 : vector<2x8x8xf32>
    %54 = vector.broadcast %2 : vector<2x1x8xf32> to vector<2x8x8xf32>
    %55 = arith.addf %53, %54 : vector<2x8x8xf32>
    %cst_23 = arith.constant dense<0xFF800000> : vector<2x8xf32>
    %56 = vector.multi_reduction <maximumf>, %55, %cst_23 [2] : vector<2x8x8xf32> to vector<2x8xf32>
    %57 = vector.shape_cast %56 : vector<2x8xf32> to vector<2x8x1xf32>
    %58 = vector.broadcast %57 : vector<2x8x1xf32> to vector<2x8x8xf32>
    %59 = arith.subf %55, %58 : vector<2x8x8xf32>
    %60 = math.exp %59 : vector<2x8x8xf32>
    %cst_24 = arith.constant dense<0.000000e+00> : vector<2x8xf32>
    %61 = vector.multi_reduction <add>, %60, %cst_24 [2] : vector<2x8x8xf32> to vector<2x8xf32>
    %62 = vector.shape_cast %61 : vector<2x8xf32> to vector<2x8x1xf32>
    %63 = tpu.reciprocal %62 {approx = true} : vector<2x8x1xf32> -> vector<2x8x1xf32>
    %64 = vector.broadcast %63 : vector<2x8x1xf32> to vector<2x8x8xf32>
    %65 = arith.mulf %60, %64 : vector<2x8x8xf32>
    %c1 = arith.constant 1 : index
    %66 = memref.load %arg3[%c1] : memref<2xf32, #tpu.memory_space<smem>>
    %67 = vector.broadcast %66 : f32 to vector<2x8x8xf32>
    %68 = arith.mulf %65, %67 : vector<2x8x8xf32>
    %c0_25 = arith.constant 0 : index
    %c1_26 = arith.constant 1 : index
    %c0_27 = arith.constant 0 : index
    %c0_28 = arith.constant 0 : index
    %69 = vector.load %arg17[%c0_25, %c1_26, %c0_27, %c0_28] : memref<2x2x8x8xf32, #tpu.memory_space<vmem>>, vector<2x1x8x8xf32>
    %70 = vector.shape_cast %69 : vector<2x1x8x8xf32> to vector<2x8x8xf32>
    %71 = vector.shape_cast %68 : vector<2x8x8xf32> to vector<2x1x8x8xf32>
    tpu.vector_store %arg17[%c0_25, %c1_26, %c0_27, %c0_28], %71 {strides = array<i32>} : memref<2x2x8x8xf32, #tpu.memory_space<vmem>>, vector<2x1x8x8xf32>,
    %72 = arith.truncf %68 : vector<2x8x8xf32> to vector<2x8x8xbf16>
    %73 = arith.truncf %48 : vector<2x8x16xf32> to vector<2x8x16xbf16>
    "tpu.trace_start"() <{level = 10 : i32, message = "bqk,bkd->bqd"}> : () -> ()
    %cst_29 = arith.constant dense<0.000000e+00> : vector<2x8x16xf32>
    %74 = tpu.matmul %72, %73, %cst_29 {dimension_numbers = #tpu.dot_dimension_numbers<[2], [1], [1], [2], [0, 0, 0, 1, 1, 2], [0], [0]>} : vector<2x8x8xbf16>, vector<2x8x16xbf16>, vector<2x8x16xf32> -> vector<2x8x16xf32>
    "tpu.trace_stop"() : () -> ()
    %75 = vector.shape_cast %74 : vector<2x8x16xf32> to vector<16x16xf32>
    %c0_30 = arith.constant 0 : index
    %c16 = arith.constant 16 : index
    %76 = vector.load %arg18[%c0_30, %c16] : memref<16x32xf32, #tpu.memory_space<vmem>>, vector<16x16xf32>
    tpu.vector_store %arg18[%c0_30, %c16], %75 {strides = array<i32>} : memref<16x32xf32, #tpu.memory_space<vmem>>, vector<16x16xf32>,
    %c0_31 = arith.constant 0 : index
    %c0_32 = arith.constant 0 : index
    %77 = vector.load %arg18[%c0_31, %c0_32] : memref<16x32xf32, #tpu.memory_space<vmem>>, vector<16x32xf32>
    %78 = arith.truncf %77 : vector<16x32xf32> to vector<16x32xbf16>
    %c0_33 = arith.constant 0 : index
    %c0_34 = arith.constant 0 : index
    %79 = vector.load %arg6[%c0_33, %c0_34] : memref<32x32xbf16, #tpu.memory_space<vmem>>, vector<32x32xbf16>
    %cst_35 = arith.constant dense<0.000000e+00> : vector<16x32xf32>
    %80 = tpu.matmul %78, %79, %cst_35 {dimension_numbers = #tpu.dot_dimension_numbers<[1], [0], [0], [1], [0, 0, 1, 1], [], []>} : vector<16x32xbf16>, vector<32x32xbf16>, vector<16x32xf32> -> vector<16x32xf32>
    %c0_36 = arith.constant 0 : index
    %c0_37 = arith.constant 0 : index
    %81 = vector.load %arg7[%c0_36, %c0_37] : memref<1x32xf32, #tpu.memory_space<vmem>>, vector<1x32xf32>
    %82 = vector.broadcast %81 : vector<1x32xf32> to vector<16x32xf32>
    %83 = arith.addf %80, %82 : vector<16x32xf32>
    %84 = arith.addf %83, %1 : vector<16x32xf32>
    %c0_38 = arith.constant 0 : index
    %c0_39 = arith.constant 0 : index
    %85 = vector.load %arg8[%c0_38, %c0_39] : memref<1x32xf32, #tpu.memory_space<vmem>>, vector<1x32xf32>
    %c0_40 = arith.constant 0 : index
    %c0_41 = arith.constant 0 : index
    %86 = vector.load %arg9[%c0_40, %c0_41] : memref<1x32xf32, #tpu.memory_space<vmem>>, vector<1x32xf32>
    %cst_42 = arith.constant dense<0.000000e+00> : vector<16xf32>
    %87 = vector.multi_reduction <add>, %84, %cst_42 [1] : vector<16x32xf32> to vector<16xf32>
    %88 = vector.shape_cast %87 : vector<16xf32> to vector<16x1xf32>
    %cst_43 = arith.constant 3.200000e+01 : f32
    %89 = vector.broadcast %cst_43 : f32 to vector<16x1xf32>
    %90 = arith.divf %88, %89 : vector<16x1xf32>
    %91 = vector.broadcast %90 : vector<16x1xf32> to vector<16x32xf32>
    %92 = arith.subf %84, %91 : vector<16x32xf32>
    %93 = vector.broadcast %90 : vector<16x1xf32> to vector<16x32xf32>
    %94 = arith.subf %84, %93 : vector<16x32xf32>
    %95 = arith.mulf %92, %94 : vector<16x32xf32>
    %cst_44 = arith.constant dense<0.000000e+00> : vector<16xf32>
    %96 = vector.multi_reduction <add>, %95, %cst_44 [1] : vector<16x32xf32> to vector<16xf32>
    %97 = vector.shape_cast %96 : vector<16xf32> to vector<16x1xf32>
    %cst_45 = arith.constant 3.200000e+01 : f32
    %98 = vector.broadcast %cst_45 : f32 to vector<16x1xf32>
    %99 = arith.divf %97, %98 : vector<16x1xf32>
    %cst_46 = arith.constant 9.99999996E-13 : f32
    %100 = vector.broadcast %cst_46 : f32 to vector<16x1xf32>
    %101 = arith.addf %99, %100 : vector<16x1xf32>
    %102 = math.rsqrt %101 : vector<16x1xf32>
    %103 = vector.broadcast %90 : vector<16x1xf32> to vector<16x32xf32>
    %104 = arith.subf %84, %103 : vector<16x32xf32>
    %105 = vector.broadcast %102 : vector<16x1xf32> to vector<16x32xf32>
    %106 = arith.mulf %104, %105 : vector<16x32xf32>
    %107 = vector.broadcast %85 : vector<1x32xf32> to vector<16x32xf32>
    %108 = arith.mulf %106, %107 : vector<16x32xf32>
    %109 = vector.broadcast %86 : vector<1x32xf32> to vector<16x32xf32>
    %110 = arith.addf %108, %109 : vector<16x32xf32>
    %111 = arith.truncf %110 : vector<16x32xf32> to vector<16x32xbf16>
    %c0_47 = arith.constant 0 : index
    %c0_48 = arith.constant 0 : index
    %112 = vector.load %arg10[%c0_47, %c0_48] : memref<32x64xbf16, #tpu.memory_space<vmem>>, vector<32x64xbf16>
    %cst_49 = arith.constant dense<0.000000e+00> : vector<16x64xf32>
    %113 = tpu.matmul %111, %112, %cst_49 {dimension_numbers = #tpu.dot_dimension_numbers<[1], [0], [0], [1], [0, 0, 1, 1], [], []>} : vector<16x32xbf16>, vector<32x64xbf16>, vector<16x64xf32> -> vector<16x64xf32>
    %c0_50 = arith.constant 0 : index
    %c0_51 = arith.constant 0 : index
    %114 = vector.load %arg11[%c0_50, %c0_51] : memref<1x64xf32, #tpu.memory_space<vmem>>, vector<1x64xf32>
    %115 = vector.broadcast %114 : vector<1x64xf32> to vector<16x64xf32>
    %116 = arith.addf %113, %115 : vector<16x64xf32>
    %cst_52 = arith.constant 5.000000e-01 : f32
    %117 = vector.broadcast %cst_52 : f32 to vector<16x64xf32>
    %118 = arith.mulf %117, %116 : vector<16x64xf32>
    %cst_53 = arith.constant 4.471500e-02 : f32
    %119 = vector.broadcast %cst_53 : f32 to vector<16x64xf32>
    %120 = arith.mulf %119, %116 : vector<16x64xf32>
    %121 = arith.mulf %120, %116 : vector<16x64xf32>
    %122 = arith.mulf %121, %116 : vector<16x64xf32>
    %123 = arith.addf %116, %122 : vector<16x64xf32>
    %cst_54 = arith.constant 0.797884583 : f32
    %124 = vector.broadcast %cst_54 : f32 to vector<16x64xf32>
    %125 = arith.mulf %124, %123 : vector<16x64xf32>
    %126 = math.tanh %125 : vector<16x64xf32>
    %cst_55 = arith.constant 1.000000e+00 : f32
    %127 = vector.broadcast %cst_55 : f32 to vector<16x64xf32>
    %128 = arith.addf %127, %126 : vector<16x64xf32>
    %129 = arith.mulf %118, %128 : vector<16x64xf32>
    %130 = arith.truncf %129 : vector<16x64xf32> to vector<16x64xbf16>
    %c0_56 = arith.constant 0 : index
    %c0_57 = arith.constant 0 : index
    %131 = vector.load %arg12[%c0_56, %c0_57] : memref<64x32xbf16, #tpu.memory_space<vmem>>, vector<64x32xbf16>
    %cst_58 = arith.constant dense<0.000000e+00> : vector<16x32xf32>
    %132 = tpu.matmul %130, %131, %cst_58 {dimension_numbers = #tpu.dot_dimension_numbers<[1], [0], [0], [1], [0, 0, 1, 1], [], []>} : vector<16x64xbf16>, vector<64x32xbf16>, vector<16x32xf32> -> vector<16x32xf32>
    %c0_59 = arith.constant 0 : index
    %c0_60 = arith.constant 0 : index
    %133 = vector.load %arg13[%c0_59, %c0_60] : memref<1x32xf32, #tpu.memory_space<vmem>>, vector<1x32xf32>
    %134 = vector.broadcast %133 : vector<1x32xf32> to vector<16x32xf32>
    %135 = arith.addf %132, %134 : vector<16x32xf32>
    %136 = arith.addf %135, %110 : vector<16x32xf32>
    %c0_61 = arith.constant 0 : index
    %c0_62 = arith.constant 0 : index
    %137 = vector.load %arg14[%c0_61, %c0_62] : memref<1x32xf32, #tpu.memory_space<vmem>>, vector<1x32xf32>
    %c0_63 = arith.constant 0 : index
    %c0_64 = arith.constant 0 : index
    %138 = vector.load %arg15[%c0_63, %c0_64] : memref<1x32xf32, #tpu.memory_space<vmem>>, vector<1x32xf32>
    %cst_65 = arith.constant dense<0.000000e+00> : vector<16xf32>
    %139 = vector.multi_reduction <add>, %136, %cst_65 [1] : vector<16x32xf32> to vector<16xf32>
    %140 = vector.shape_cast %139 : vector<16xf32> to vector<16x1xf32>
    %cst_66 = arith.constant 3.200000e+01 : f32
    %141 = vector.broadcast %cst_66 : f32 to vector<16x1xf32>
    %142 = arith.divf %140, %141 : vector<16x1xf32>
    %143 = vector.broadcast %142 : vector<16x1xf32> to vector<16x32xf32>
    %144 = arith.subf %136, %143 : vector<16x32xf32>
    %145 = vector.broadcast %142 : vector<16x1xf32> to vector<16x32xf32>
    %146 = arith.subf %136, %145 : vector<16x32xf32>
    %147 = arith.mulf %144, %146 : vector<16x32xf32>
    %cst_67 = arith.constant dense<0.000000e+00> : vector<16xf32>
    %148 = vector.multi_reduction <add>, %147, %cst_67 [1] : vector<16x32xf32> to vector<16xf32>
    %149 = vector.shape_cast %148 : vector<16xf32> to vector<16x1xf32>
    %cst_68 = arith.constant 3.200000e+01 : f32
    %150 = vector.broadcast %cst_68 : f32 to vector<16x1xf32>
    %151 = arith.divf %149, %150 : vector<16x1xf32>
    %cst_69 = arith.constant 9.99999996E-13 : f32
    %152 = vector.broadcast %cst_69 : f32 to vector<16x1xf32>
    %153 = arith.addf %151, %152 : vector<16x1xf32>
    %154 = math.rsqrt %153 : vector<16x1xf32>
    %155 = vector.broadcast %142 : vector<16x1xf32> to vector<16x32xf32>
    %156 = arith.subf %136, %155 : vector<16x32xf32>
    %157 = vector.broadcast %154 : vector<16x1xf32> to vector<16x32xf32>
    %158 = arith.mulf %156, %157 : vector<16x32xf32>
    %159 = vector.broadcast %137 : vector<1x32xf32> to vector<16x32xf32>
    %160 = arith.mulf %158, %159 : vector<16x32xf32>
    %161 = vector.broadcast %138 : vector<1x32xf32> to vector<16x32xf32>
    %162 = arith.addf %160, %161 : vector<16x32xf32>
    %163 = vector.shape_cast %162 : vector<16x32xf32> to vector<2x8x32xf32>
    %c0_70 = arith.constant 0 : index
    %c0_71 = arith.constant 0 : index
    %c0_72 = arith.constant 0 : index
    %164 = vector.load %arg16[%c0_70, %c0_71, %c0_72] : memref<2x8x32xf32, #tpu.memory_space<vmem>>, vector<2x8x32xf32>
    tpu.vector_store %arg16[%c0_70, %c0_71, %c0_72], %163 {strides = array<i32>} : memref<2x8x32xf32, #tpu.memory_space<vmem>>, vector<2x8x32xf32>,
    return
  }
  func.func @transform_0(%arg0: i32) -> (i32, i32, i32) {
    %c0_i32 = arith.constant 0 : i32
    %c0_i32_0 = arith.constant 0 : i32
    %c0_i32_1 = arith.constant 0 : i32
    return %arg0, %c0_i32, %c0_i32_0 : i32, i32, i32
  }
  func.func @transform_1(%arg0: i32) -> (i32, i32, i32) {
    %c0_i32 = arith.constant 0 : i32
    %c0_i32_0 = arith.constant 0 : i32
    %c0_i32_1 = arith.constant 0 : i32
    return %arg0, %c0_i32, %c0_i32_0 : i32, i32, i32
  }
  func.func @transform_2(%arg0: i32) -> i32 {
    %c0_i32 = arith.constant 0 : i32
    %c0_i32_0 = arith.constant 0 : i32
    return %c0_i32 : i32
  }
  func.func @transform_3(%arg0: i32) -> (i32, i32) {
    %c0_i32 = arith.constant 0 : i32
    %c0_i32_0 = arith.constant 0 : i32
    %c0_i32_1 = arith.constant 0 : i32
    return %c0_i32, %c0_i32_0 : i32, i32
  }
  func.func @transform_4(%arg0: i32) -> (i32, i32) {
    %c0_i32 = arith.constant 0 : i32
    %c0_i32_0 = arith.constant 0 : i32
    %c0_i32_1 = arith.constant 0 : i32
    return %c0_i32, %c0_i32_0 : i32, i32
  }
  func.func @transform_5(%arg0: i32) -> (i32, i32) {
    %c0_i32 = arith.constant 0 : i32
    %c0_i32_0 = arith.constant 0 : i32
    %c0_i32_1 = arith.constant 0 : i32
    return %c0_i32, %c0_i32_0 : i32, i32
  }
  func.func @transform_6(%arg0: i32) -> (i32, i32) {
    %c0_i32 = arith.constant 0 : i32
    %c0_i32_0 = arith.constant 0 : i32
    %c0_i32_1 = arith.constant 0 : i32
    return %c0_i32, %c0_i32_0 : i32, i32
  }
  func.func @transform_7(%arg0: i32) -> (i32, i32) {
    %c0_i32 = arith.constant 0 : i32
    %c0_i32_0 = arith.constant 0 : i32
    %c0_i32_1 = arith.constant 0 : i32
    return %c0_i32, %c0_i32_0 : i32, i32
  }
  func.func @transform_8(%arg0: i32) -> (i32, i32) {
    %c0_i32 = arith.constant 0 : i32
    %c0_i32_0 = arith.constant 0 : i32
    %c0_i32_1 = arith.constant 0 : i32
    return %c0_i32, %c0_i32_0 : i32, i32
  }
  func.func @transform_9(%arg0: i32) -> (i32, i32) {
    %c0_i32 = arith.constant 0 : i32
    %c0_i32_0 = arith.constant 0 : i32
    %c0_i32_1 = arith.constant 0 : i32
    return %c0_i32, %c0_i32_0 : i32, i32
  }
  func.func @transform_10(%arg0: i32) -> (i32, i32) {
    %c0_i32 = arith.constant 0 : i32
    %c0_i32_0 = arith.constant 0 : i32
    %c0_i32_1 = arith.constant 0 : i32
    return %c0_i32, %c0_i32_0 : i32, i32
  }
  func.func @transform_11(%arg0: i32) -> (i32, i32) {
    %c0_i32 = arith.constant 0 : i32
    %c0_i32_0 = arith.constant 0 : i32
    %c0_i32_1 = arith.constant 0 : i32
    return %c0_i32, %c0_i32_0 : i32, i32
  }
  func.func @transform_12(%arg0: i32) -> (i32, i32) {
    %c0_i32 = arith.constant 0 : i32
    %c0_i32_0 = arith.constant 0 : i32
    %c0_i32_1 = arith.constant 0 : i32
    return %c0_i32, %c0_i32_0 : i32, i32
  }
  func.func @transform_13(%arg0: i32) -> (i32, i32) {
    %c0_i32 = arith.constant 0 : i32
    %c0_i32_0 = arith.constant 0 : i32
    %c0_i32_1 = arith.constant 0 : i32
    return %c0_i32, %c0_i32_0 : i32, i32
  }
  func.func @transform_14(%arg0: i32) -> (i32, i32) {
    %c0_i32 = arith.constant 0 : i32
    %c0_i32_0 = arith.constant 0 : i32
    %c0_i32_1 = arith.constant 0 : i32
    return %c0_i32, %c0_i32_0 : i32, i32
  }
  func.func @transform_15(%arg0: i32) -> (i32, i32, i32) {
    %c0_i32 = arith.constant 0 : i32
    %c0_i32_0 = arith.constant 0 : i32
    %c0_i32_1 = arith.constant 0 : i32
    return %arg0, %c0_i32, %c0_i32_0 : i32, i32, i32
  }
  func.func @transform_16(%arg0: i32) -> (i32, i32, i32, i32) {
    %c0_i32 = arith.constant 0 : i32
    %c0_i32_0 = arith.constant 0 : i32
    %c0_i32_1 = arith.constant 0 : i32
    %c0_i32_2 = arith.constant 0 : i32
    return %arg0, %c0_i32, %c0_i32_0, %c0_i32_1 : i32, i32, i32, i32
  }
}

</mosaic_0001>

<bundles_post_ra>
// kernel: tpu_custom_call.1
= control target key start
LH: loop header
LB: loop body
LE: loop exit
PB: predicated region body
PF: predicated region fallthrough
CT: control target
= control target key end

     0   :  { %s2960_s0 = inlined_call_operand.vmem [shape: f32[4,8,32], index: 0, kind: input, shape index: {}]   ;;  %s2961_s1 = inlined_call_operand.hbm [shape: f32[4,1,8], index: 1, kind: input, shape index: {}]   ;;  %s2962_s2 = inlined_call_operand.vmem [shape: f32[2], index: 2, kind: input, shape index: {}]   ;;  %s2963_s3 = inlined_call_operand.vmem [shape: bf16[32,96], index: 3, kind: input, shape index: {}]   ;;  %s2964_s4 = inlined_call_operand.vmem [shape: f32[1,96], index: 4, kind: input, shape index: {}]   ;;  %s2965_s5 = inlined_call_operand.hbm [shape: bf16[32,32], index: 5, kind: input, shape index: {}]   ;;  %s2966_s6 = inlined_call_operand.hbm [shape: f32[1,32], index: 6, kind: input, shape index: {}]   ;;  %s2967_s7 = inlined_call_operand.hbm [shape: f32[1,32], index: 7, kind: input, shape index: {}]   ;;  %s2968_s8 = inlined_call_operand.hbm [shape: f32[1,32], index: 8, kind: input, shape index: {}]   ;;  %s2969_s9 = inlined_call_operand.vmem [shape: bf16[32,64], index: 9, kind: input, shape index: {}]   ;;  %s2970_s10 = inlined_call_operand.vmem [shape: f32[1,64], index: 10, kind: input, shape index: {}]   ;;  %s2971_s11 = inlined_call_operand.vmem [shape: bf16[64,32], index: 11, kind: input, shape index: {}]   ;;  %s2972_s12 = inlined_call_operand.vmem [shape: f32[1,32], index: 12, kind: input, shape index: {}]   ;;  %s2973_s13 = inlined_call_operand.vmem [shape: f32[1,32], index: 13, kind: input, shape index: {}]   ;;  %s2974_s14 = inlined_call_operand.vmem [shape: f32[1,32], index: 14, kind: input, shape index: {}]   ;;  %s2975_s15 = inlined_call_operand.hbm [shape: f32[4,8,32], index: 15, kind: output, shape index: {0}]   ;;  %s2976_s16 = inlined_call_operand.hbm [shape: f32[4,2,8,8], index: 16, kind: output, shape index: {1}]  }
   0x1   :  { %2984 = sst [smem:[#allocation23_spill]] %s2960_s0 }
   0x2   :  { %2985 = sst [smem:[#allocation24_spill]] %s2962_s2 }
   0x3   :  { %2986 = sst [smem:[#allocation25_spill]] %s2970_s10 }
   0x4   :  { %2987 = sst [smem:[#allocation26_spill]] %s2972_s12 }
   0x5   :  { %2988 = sst [smem:[#allocation27_spill]] %s2973_s13 }
   0x6   :  { %2989 = sst [smem:[#allocation28_spill]] %s2974_s14 }
   0x7   :  { %2990 = sst [smem:[#allocation29_spill]] %s2975_s15 }
   0x8   :  { %2991 = sst [smem:[#allocation30_spill]] %s2976_s16 }
   0x9   :  { %22 = vsyncpa [#allocation4], 0 }
   0xa   :  { %24 = vsyncpa [#allocation4 + $0x1], 0 }
   0xb   :  { %25 = vsyncpa [#allocation6], 0 }
   0xc   :  { %26 = vsyncpa [#allocation9], 0 }
   0xd   :  { %27 = vsyncpa [#allocation12], 0 }
   0xe   :  { %28 = vsyncpa [#allocation5], 0 }
   0xf   :  { %30 = vsyncpa [#allocation5 + $0x1], 0 }
  0x10   :  { %31 = vsyncpa [#allocation16], 0 }
  0x11   :  { %33 = vsyncpa [#allocation16 + $0x1], 0  ;;  %s2458_s21 = smov 0   ;;  %s2460_s22 = smov 0  }
  0x12   :  { %s2462_s23 = smov 0   ;;  %s2464_s24 = smov 0  }
  0x13 LB: > { %s2351_s25 = smov [#allocation8]   ;;  %s2479_s27 = sadd.s32 4294967295, %s2349_s24   ;;  %s2349_s24 = sphi %s2464_s24, %s3023_s24   ;;  %s2345_s23 = sphi %s2462_s23, %s3022_s23   ;;  %s2341_s22 = sphi %s2460_s22, %s3021_s22   ;;  %s2337_s21 = sphi %s2458_s21, %s3020_s21  }
  0x14   : > { %s450_s26 = sshll.u32 %s2351_s25, 4  ;;  %p1745_p0 = scmp.ge.s32.totalorder %s2349_s24, 1  ;;  %s2484_s26 = int_to_ptr.vmem [resolvable:$true] %s450_s26 }
  0x15   : > { %p2979_p1 = scmp.eq.s32.totalorder %s2479_s27, 0  ;;  %p421_p2 = scmp.lt.s32.totalorder %s2349_s24, 3 }
  0x16   : > { %s2352_s29 = smov [#allocation11]   ;;  %s2993_s2 = sld [smem:[#allocation24_spill]] }
  0x17   : > { %p2486_p3 = pnand %p1745_p0, %p421_p2  ;;  %s475_s30 = sshll.u32 %s2352_s29, 4  ;;  %s2502_s30 = int_to_ptr.vmem [resolvable:$true] %s475_s30 }
  0x18   : > { %s2082_s15 = scalar_lea.hbm %s2965_s5, 256 }
  0x19   : > { %s2992_s28 = scalar_select %p2486_p3, 1, 0 }
  0x1a   : > { %p1954_p5 = pneg %p2486_p3  ;;  %p2083_p7 = scmp.ne.s32.totalorder %s2965_s5, %s2082_s15 }
  0x1b   : > { %p2089_p11 = scmp.lt.u32.totalorder %s2082_s15, %s2965_s5 }
  0x1c   : > { %s434_s18 = sshll.u32 %s2993_s2, 4  ;;  %p2498_p6 = pnand %p1954_p5, %p2979_p1  ;;  %s2504_s18 = int_to_ptr.vmem [resolvable:$true] %s434_s18 }
  0x1e   : > { %p2514_p8 = pneg %p2498_p6 }
  0x20   : > { %p2085_p9 = pnand %p2514_p8, %p2083_p7 }
  0x22   : > { %p2086_p10 = pneg %p2085_p9 }
  0x24   : > { %p2091_p12 = pnand %p2089_p11, %p2086_p10 }
  0x26   : > { %2094 = shalt.err (!%p2091_p12)
}
  0x27   : > { %s2095_s14 = scalar_lea.vmem %s2484_s26, 256  ;;  %p2103_p5 = scmp.lt.s32.totalorder %s2484_s26, %s2484_s26 }
  0x28   : > { %p2096_p13 = scmp.ne.s32.totalorder %s2484_s26, %s2095_s14  ;;  %p2104_p4 = scmp.lt.s32.totalorder %s2095_s14, %s2095_s14 }
  0x2a   : > { %p2098_p0 = pnand %p2096_p13, %p2514_p8  ;;  %p2105_p7 = por %p2104_p4, %p2103_p5 }
  0x2c   : > { %p2099_p2 = pneg %p2098_p0 }
  0x2e   : > { %p2106_p9 = pnand %p2105_p7, %p2099_p2 }
  0x30   : > { %2109 = shalt.err (!%p2106_p9)
}
  0x31   : > { %s2353_s20 = smov 64   ;;  %s2354_s2 = smov 4  }
  0x32   : > { %1960 = dma.hbm_to_vmem [thread:$0]  (!%p2498_p6), %s2965_s5, 256, %s2484_s26, [#allocation9], %s2353_s20, %s2353_s20, %s2354_s2  }
  0x33   : > { %s2110_s13 = scalar_lea.hbm %s2967_s7, 16 }
  0x34   : > { %p2111_p4 = scmp.ne.s32.totalorder %s2967_s7, %s2110_s13  ;;  %p2117_p12 = scmp.lt.u32.totalorder %s2110_s13, %s2967_s7 }
  0x36   : > { %p2113_p10 = pnand %p2111_p4, %p2514_p8 }
  0x38   : > { %p2114_p11 = pneg %p2113_p10 }
  0x3a   : > { %p2119_p13 = pnand %p2117_p12, %p2114_p11 }
  0x3c   : > { %2122 = shalt.err (!%p2119_p13)
}
  0x3d   : > { %s2123_s26 = scalar_lea.vmem %s2502_s30, 16  ;;  %s2130_s12 = scalar_lea.vmem %s2502_s30, 32 }
  0x3e   : > { %p2124_p0 = scmp.ne.s32.totalorder %s2502_s30, %s2123_s26  ;;  %p2131_p7 = scmp.lt.s32.totalorder %s2502_s30, %s2502_s30 }
  0x3f   : > { %p2132_p9 = scmp.lt.s32.totalorder %s2130_s12, %s2123_s26 }
  0x40   : > { %p2126_p2 = pnand %p2124_p0, %p2514_p8 }
  0x41   : > { %p2133_p4 = por %p2132_p9, %p2131_p7 }
  0x42   : > { %p2127_p5 = pneg %p2126_p2 }
  0x44   : > { %p2134_p10 = pnand %p2133_p4, %p2127_p5 }
  0x46   : > { %2137 = shalt.err (!%p2134_p10)
}
  0x47   : > { %1966 = dma.hbm_to_vmem [thread:$0]  (!%p2498_p6), %s2967_s7, 16, %s2502_s30, [#allocation12]  }
  0x48   : > { %s2138_s16 = scalar_lea.vmem %s2504_s18, 16  ;;  %p2146_p0 = scmp.lt.s32.totalorder %s2504_s18, %s2504_s18 }
  0x49   : > { %p2139_p11 = scmp.ne.s32.totalorder %s2504_s18, %s2138_s16  ;;  %p2147_p2 = scmp.lt.s32.totalorder %s2138_s16, %s2138_s16 }
  0x4b   : > { %p2141_p12 = pnand %p2139_p11, %p2514_p8  ;;  %p2148_p5 = por %p2147_p2, %p2146_p0 }
  0x4d   : > { %p2142_p13 = pneg %p2141_p12 }
  0x4f   : > { %p2149_p7 = pnand %p2148_p5, %p2142_p13 }
  0x51   : > { %2152 = shalt.err (!%p2149_p7)
}
  0x52   : > { %s2355_s20 = smov [#allocation7]   ;;  %s2356_s2 = smov [#allocation10]  }
  0x53   : > { %1957 = dma.vmem_to_smem (!%p2498_p6), %s2504_s18, 16, %s2355_s20, [#allocation6]  }
  0x54   : > { %s464_s15 = sshll.u32 %s2356_s2, 4  ;;  %s2357_s30 = smov [#allocation13]   ;;  %s465_s15 = int_to_ptr.vmem [resolvable:$true] %s464_s15 }
  0x55   : > { %s486_s25 = sshll.u32 %s2357_s30, 4  ;;  %s2153_s14 = scalar_lea.hbm %s2966_s6, 16  ;;  %s487_s25 = int_to_ptr.vmem [resolvable:$true] %s486_s25 }
  0x56   : > { %p2154_p9 = scmp.ne.s32.totalorder %s2966_s6, %s2153_s14  ;;  %p2160_p11 = scmp.lt.u32.totalorder %s2153_s14, %s2966_s6 }
  0x58   : > { %p2156_p4 = pnand %p2154_p9, %p2514_p8 }
  0x5a   : > { %p2157_p10 = pneg %p2156_p4 }
  0x5c   : > { %p2162_p12 = pnand %p2160_p11, %p2157_p10 }
  0x5e   : > { %2165 = shalt.err (!%p2162_p12)
}
  0x5f   : > { %s2166_s18 = scalar_lea.vmem %s465_s15, 16  ;;  %s2173_s16 = scalar_lea.vmem %s465_s15, 32 }
  0x60   : > { %p2167_p13 = scmp.ne.s32.totalorder %s465_s15, %s2166_s18  ;;  %p2174_p5 = scmp.lt.s32.totalorder %s465_s15, %s465_s15 }
  0x61   : > { %p2175_p7 = scmp.lt.s32.totalorder %s2173_s16, %s2166_s18 }
  0x62   : > { %p2169_p0 = pnand %p2167_p13, %p2514_p8 }
  0x63   : > { %p2176_p1 = por %p2175_p7, %p2174_p5 }
  0x64   : > { %p2170_p2 = pneg %p2169_p0 }
  0x66   : > { %p2177_p3 = pnand %p2176_p1, %p2170_p2 }
  0x68   : > { %2180 = shalt.err (!%p2177_p3)
}
  0x69   : > { %1963 = dma.hbm_to_vmem [thread:$0]  (!%p2498_p6), %s2966_s6, 16, %s465_s15, [#allocation9]  }
  0x6a   : > { %s2181_s17 = scalar_lea.hbm %s2968_s8, 16 }
  0x6b   : > { %p2182_p9 = scmp.ne.s32.totalorder %s2968_s8, %s2181_s17  ;;  %p2188_p3 = scmp.lt.u32.totalorder %s2181_s17, %s2968_s8 }
  0x6d   : > { %p2184_p4 = pnand %p2182_p9, %p2514_p8 }
  0x6f   : > { %p2185_p1 = pneg %p2184_p4 }
  0x71   : > { %p2190_p10 = pnand %p2188_p3, %p2185_p1 }
  0x73   : > { %2193 = shalt.err (!%p2190_p10)
}
  0x74   : > { %s2194_s13 = scalar_lea.vmem %s487_s25, 16  ;;  %s2201_s15 = scalar_lea.vmem %s487_s25, 32 }
  0x75   : > { %p2195_p11 = scmp.ne.s32.totalorder %s487_s25, %s2194_s13  ;;  %p2202_p0 = scmp.lt.s32.totalorder %s487_s25, %s487_s25 }
  0x76   : > { %p2203_p2 = scmp.lt.s32.totalorder %s2201_s15, %s2194_s13 }
  0x77   : > { %p2197_p12 = pnand %p2195_p11, %p2514_p8 }
  0x78   : > { %p2204_p5 = por %p2203_p2, %p2202_p0 }
  0x79   : > { %p2198_p13 = pneg %p2197_p12 }
  0x7b   : > { %p2205_p7 = pnand %p2204_p5, %p2198_p13 }
  0x7d   : > { %2208 = shalt.err (!%p2205_p7)
}
  0x7e   : > { %1969 = dma.hbm_to_vmem [thread:$0]  (!%p2498_p6), %s2968_s8, 16, %s487_s25, [#allocation12]  }
  0x7f   : > { %s1744_s0 = sadd.s32 4294967294, %s2349_s24   ;;  %s2606_s19 = sadd.s32 1, %s2349_s24  }
  0x80   : > { %s72_s20 = sadd.s32 1, %s2345_s23  ;;  %s69_s2 = ssub.s32 %s2349_s24, %s2606_s19 }
  0x81   : > { %p79_p8 = scmp.ne.s32.totalorder %s2345_s23, %s2341_s22  ;;  %p70_p9 = scmp.eq.s32.totalorder %s69_s2, 0 }
  0x82   : > { %p80_p4 = scmp.eq.s32.totalorder %s2349_s24, 0  ;;  %p85_p1 = scmp.ne.s32.totalorder %s2341_s22, %s2337_s21 }
  0x83   : > { %p382_p3 = scmp.eq.s32.totalorder %s2479_s27, 1  ;;  %p2996_p11 = scmp.eq.s32.totalorder %s2479_s27, 0 }
  0x84   : > { %s2618_s30 = scalar_select %p70_p9, %s2345_s23, %s72_s20  }
  0x85   : > { %p81_p10 = por %p80_p4, %p79_p8  ;;  %p2622_p12 = por %p2996_p11, %p85_p1 }
  0x86   : > { %p2626_p6 = por %p382_p3, %p79_p8  ;;  %p388_p13 = scmp.eq.s32.totalorder %s1744_s0, 1 }
  0x87   : > { %p1986_p0 = scmp.lt.s32.totalorder %s2349_s24, 2  ;;  %s524_s17 = sand.u32 1, %s2345_s23  }
  0x88   : > { %s2998_s25 = scalar_select %p2626_p6, 1, 0 }
  0x89   : > { %p2632_p2 = por %p388_p13, %p85_p1  ;;  %s1752_s26 = sshll.u32 %s524_s17, 1 }
  0x8a   : > { %s1810_s12 = sshll.u32 %s2349_s24, 5  ;;  %s528_s18 = scalar_lea.vmem [#allocation3], %s1752_s26 }
  0x8b   : > { %s2999_s14 = scalar_select %p2632_p2, 1, 0 }
  0x8c   : > { %s2640_s15 = scalar_lea.hbm %s2961_s1, %s1810_s12  ;;  %s535_s16 = sshll.u32 %s528_s18, 4  ;;  %s2646_s16 = int_to_ptr.vmem [resolvable:$true] %s535_s16 }
  0x8d   : > { %p2642_p5 = pnand %p1986_p0, %p81_p10  ;;  %s2648_s20 = scalar_lea.sflag [#allocation4], %s524_s17 }
  0x8e   : > { %s2209_s2 = scalar_lea.hbm %s2640_s15, 32  ;;  %s2214_s10 = scalar_lea.hbm %s2961_s1, 64 }
  0x8f   : > { %p2210_p7 = scmp.ne.s32.totalorder %s2640_s15, %s2209_s2  ;;  %p2211_p8 = pneg %p2642_p5 }
  0x90   : > { %p2215_p1 = scmp.lt.u32.totalorder %s2640_s15, %s2961_s1  ;;  %p2216_p3 = scmp.lt.u32.totalorder %s2214_s10, %s2209_s2 }
  0x91   : > { %p2212_p9 = pnand %p2211_p8, %p2210_p7  ;;  %p2218_p11 = scmp.lt.u32.totalorder %s2209_s2, %s2640_s15 }
  0x92   : > { %p2217_p10 = por %p2216_p3, %p2215_p1 }
  0x93   : > { %p2213_p4 = pneg %p2212_p9 }
  0x94   : > { %p2219_p13 = por %p2218_p11, %p2217_p10 }
  0x96   : > { %p2220_p0 = pnand %p2219_p13, %p2213_p4 }
  0x98   : > { %2223 = shalt.err (!%p2220_p0)
}
  0x99   : > { %s2224_s17 = scalar_lea.vmem %s2646_s16, 32  ;;  %s2358_s26 = smov [#allocation3]  }
  0x9a   : > { %p2225_p7 = scmp.ne.s32.totalorder %s2646_s16, %s2224_s17  ;;  %s2229_s12 = sshll.u32 %s2358_s26, 4  ;;  %s2230_s12 = int_to_ptr.vmem [resolvable:$false] %s2229_s12 }
  0x9b   : > { %s2231_s13 = scalar_lea.vmem %s2230_s12, 64  ;;  %p2232_p6 = scmp.lt.s32.totalorder %s2646_s16, %s2230_s12 }
  0x9c   : > { %p2227_p9 = pnand %p2225_p7, %p2211_p8  ;;  %p2233_p1 = scmp.lt.s32.totalorder %s2231_s13, %s2224_s17 }
  0x9e   : > { %p2228_p2 = pneg %p2227_p9  ;;  %p2234_p3 = por %p2233_p1, %p2232_p6 }
  0xa0   : > { %p2235_p10 = pnand %p2234_p3, %p2228_p2 }
  0xa2   : > { %2238 = shalt.err (!%p2235_p10)
}
  0xa3   : > { %s2359_s2 = smov 16   ;;  %s2360_s10 = smov 1  }
  0xa4   : > { %1973 = dma.hbm_to_vmem [thread:$0]  (!%p2642_p5), %s2640_s15, 32, %s2646_s16, %s2648_s20, %s2359_s2, %s2359_s2, %s2360_s10  }
  0xa5   : > { %p3001_p8 = scmp.ne.s32.totalorder %s2992_s28, 0 }
  0xa6   : > { %s2679_s18 = sand.u32 (!%p3001_p8), 1, %s2341_s22  }
  0xa7   : > { %547 = sbr.rel (%p3001_p8) target bundleno = 3277 (0xccd), region = 80  ;;  %s1756_s17 = sshll.u32 (!%p3001_p8), %s2679_s18, 1 }
  0xa8   : > { %s550_s26 = scalar_lea.sflag (!%p3001_p8), [#allocation4], %s2679_s18  ;;  %s2683_s12 = scalar_lea.vmem (!%p3001_p8), [#allocation3], %s1756_s17 }
  0xae   : > { %2312 = dma.done.wait (%p2622_p12), %s550_s26, 32  }
  0xaf   : > { %2314 = vsyncadd (%p2622_p12), %s550_s26, 4294967264  ;;  %p3002_p6 = scmp.eq.s32.totalorder %s2479_s27, 0 }
  0xb1   : > { %2316 = dma.done.wait (%p3002_p6), [#allocation6], 16   ;;  %p3003_p2 = pmov %p3002_p6 }
  0xb3   : > { %2318 = vsyncadd (%p3003_p2), [#allocation6], 4294967280  ;;  %p3004_p5 = pmov %p3003_p2 }
  0xb4   : > { %p3005_p4 = pmov %p3003_p2 }
  0xb5   : > { %2320 = dma.done.wait (%p3004_p5), [#allocation9], 272  }
  0xb6   : > { %2322 = vsyncadd (%p3005_p4), [#allocation9], 4294967024  ;;  %p3006_p11 = pmov %p3003_p2 }
  0xb7   : > { %p3007_p13 = pmov %p3003_p2 }
  0xb8   : > { %2324 = dma.done.wait (%p3006_p11), [#allocation12], 32  }
  0xb9   : > { %2326 = vsyncadd (%p3007_p13), [#allocation12], 4294967264 }
  0xba   : > { %578 = sfence }
  0xbb   : > { %v2044_v0 = vld [vmem:[%s2963_s3] sm:$0xff]   ;;  %v2361_v1 = vmov 0.0   ;;  %v2045_v2 = vld [vmem:[%s2963_s3 + $0x8] sm:$0xff]   ;;  %vm2362_vm0 = vmmov 0   ;;  %s1764_s0 = sshll.u32 %s2479_s27, 1  ;;  %s3008_s10 = sld [smem:[#allocation23_spill]] }
  0xbc   : > { %1844 = vmatprep.subr.bf16.mxu0 %v2361_v1  ;;  %1852 = vmatprep.subr.bf16.mxu1 %v2361_v1  ;;  %p634_p12 = scmp.lt.s32.totalorder %s1764_s0, 3  ;;  %vm671_vm1 = vcmask 261120   ;;  %v1766_v6 = vld [vmem:[%s2964_s4] ss:$0 sm:$0xff]  ;;  %s2363_s29 = smov 96   ;;  %vm721_vm2 = vcmask 130048  }
  0xbd   : > { %1845 = vmatpush3.bf16.msra.mxu0 %v2044_v0  ;;  %1848 = vmatprep.mubr.msk.bf16.mxu0 %vm2362_vm0, %v2361_v1  ;;  %v2750_v20 = vld [vmem:[%s2683_s12] ss:$0 sm:$0xff]  ;;  %vm833_vm3 = vcmask 64512   ;;  %v2754_v27 = vld [vmem:[%s2683_s12 + $0x1] ss:$0 sm:$0xff]  ;;  %s2364_s15 = smov 64  }
  0xbe   : > { %1846 = vmatprep.subr.bf16.mxu0 %v2361_v1  ;;  %1854 = vmatprep.mubr.msk.bf16.mxu1 %vm2362_vm0, %v2361_v1  ;;  %s3025_s0 = smov (!%p634_p12, %s1764_s0), 3  ;;  %s2365_s16 = smov 80   ;;  %vm869_vm4 = vcmask 1043456   ;;  %vm1202_vm5 = vcmask 261248   ;;  %vm1448_vm6 = vcmask 523264  }
  0xbf   : > { %s1765_s20 = sshll.u32 %s3025_s0, 3  ;;  %s2366_s12 = smov 112  }
  0xc0   : > { %s856_s0 = sld [smem:[#allocation7]]  ;;  %s2367_s2 = smov 48  }
  0xc1   : > { %1847 = vmatpush3.bf16.msra.mxu0 %v2045_v2  ;;  %s637_s17 = scalar_lea.vmem %s3008_s10, %s1765_s20  ;;  %s1763_s20 = sshll.u32 %s2679_s18, 5 }
  0xc2   : > { %1858 = vmatprep.subr.bf16.mxu0 %v2361_v1  ;;  %v2719_v3 = vld [vmem:[%s637_s17] sm:$0xff]  ;;  %v2721_v4 = vld [vmem:[%s637_s17 + $0x8] sm:$0xff]  ;;  %s2772_s13 = scalar_lea.vmem [#allocation15], %s1763_s20  ;;  %s1778_s10 = sld [smem:[#allocation7 + $0x1]] }
  0xc3   : > { %v647_v5 = vpack.c.bf16 %v2721_v4, %v2719_v3  ;;  %s2368_s17 = smov 16   ;;  %s1813_s20 = sshll.u32 %s2479_s27, 9 }
  0xc4   : > { %s3011_s26 = sld [smem:[#allocation30_spill]]  ;;  %p3012_p7 = scmp.ne.s32.totalorder %s2998_s25, 0 }
  0xc5   : > { %1849 = vmatmul.mubr.msk.bf16.vlgmr.msra.gmra.mrb[0].mxu0 %vm671_vm1, %v647_v5 }
  0xc6   : > { %1860 = vmatprep.mubr.msk.bf16.mxu0 %vm2362_vm0, %v2361_v1  ;;  %v857_v53 = vstv %s856_s0  ;;  %s3010_s0 = sld [smem:[#allocation26_spill]] }
  0xca   : > { %s2867_s28 = scalar_lea.hbm %s3011_s26, %s1813_s20 }
 0x198   : > { %v709_v7 = vpop.f32.mrb[0].mxu0 }
 0x199   : > { %v710_v8 = vadd.f32 %v1766_v6, %v709_v7  ;;  %v1850_v9 = vpop.f32.mrb[1].mxu0 }
 0x19a   : > { %v712_v10 = vpop.f32.mrb[2].mxu0 }
 0x19b   : > { %v2731_v11 = vpack.c.bf16 %v710_v8, %v710_v8  ;;  %v713_v12 = vadd.f32 %v1766_v6, %v712_v10  ;;  %v1851_v13 = vpop.f32.mrb[3].mxu0 }
 0x19d   : > { %719 = vrot.lane.b32.xlu0 %v2731_v11, %s2363_s29  ;;  %v2734_v14 = vpack.c.bf16 %v713_v12, %v713_v12 }
 0x1a1   : > { %769 = vrot.lane.b32.xlu0 %v2734_v14, %s2363_s29  ;;  %s1547_s29 = scalar_lea.sflag [#allocation16], %s2679_s18 }
 0x20f   : > { %v720_v15 = vpop.permute.xlu0 %719 }
 0x210   : > { %v726_v16 = vsel %vm721_vm2, %v720_v15, 0 }
 0x211   : > { %1853 = vmatpush3.bf16.xpose.msra.mxu1 %v726_v16 }
 0x212   : > { %1864 = vmatprep.subr.bf16.mxu1 %v2361_v1 }
 0x213   : > { %v770_v17 = vpop.permute.xlu0 %769 }
 0x214   : > { %v775_v18 = vsel %vm721_vm2, %v770_v17, 0 }
 0x215   : > { %1859 = vmatpush3.bf16.xpose.msra.mxu0 %v775_v18 }
 0x216   : > { %1870 = vmatprep.subr.bf16.mxu0 %v2361_v1 }
 0x218   : > { %1855 = vmatmul.mubr.msk.bf16.vlgmr.msra.gmra.mrb[0].mxu1 %vm721_vm2, %v2731_v11 }
 0x219   : > { %1866 = vmatprep.mubr.msk.bf16.mxu1 %vm2362_vm0, %v2361_v1 }
 0x21c   : > { %1861 = vmatmul.mubr.msk.bf16.vlgmr.msra.gmra.mrb[4].mxu0 %vm721_vm2, %v2734_v14 }
 0x21d   : > { %1872 = vmatprep.mubr.msk.bf16.mxu0 %vm2362_vm0, %v2361_v1 }
 0x2eb   : > { %v762_v19 = vpop.f32.mrb[0].mxu1 }
 0x2ec   : > { %v817_v21 = vmul.f32 0.25, %v762_v19  ;;  %v1856_v22 = vpop.f32.mrb[1].mxu1 }
 0x2ed   : > { %v765_v23 = vpop.f32.mrb[2].mxu1 }
 0x2ee   : > { %v1857_v24 = vpop.f32.mrb[3].mxu1  ;;  %v831_v25 = vadd.f32 %v2750_v20, %v817_v21 }
 0x2ef   : > { %v811_v26 = vpop.f32.mrb[4].mxu0 }
 0x2f0   : > { %v818_v28 = vmul.f32 0.25, %v811_v26  ;;  %v1862_v29 = vpop.f32.mrb[5].mxu0  ;;  %v834_v30 = vsel %vm833_vm3, %v831_v25, -inf }
 0x2f1   : > { %835 = vmax.xlane.f32.xlu1 %v834_v30  ;;  %v814_v31 = vpop.f32.mrb[6].mxu0 }
 0x2f2   : > { %v1863_v32 = vpop.f32.mrb[7].mxu0  ;;  %v832_v33 = vadd.f32 %v2754_v27, %v818_v28 }
 0x2f4   : > { %v837_v34 = vsel %vm833_vm3, %v832_v33, -inf }
 0x2f5   : > { %838 = vmax.xlane.f32.xlu1 %v837_v34 }
 0x306   : > { %864 = vrot.lane.b32.xlu1 %v2731_v11, %s2364_s15 }
 0x30a   : > { %913 = vrot.lane.b32.xlu1 %v2734_v14, %s2364_s15  ;;  %s3009_s15 = sld [smem:[#allocation25_spill]] }
 0x30e   : > { %965 = vrot.lane.b32.xlu1 %v2731_v11, %s2365_s16 }
 0x37e   : > { %v836_v35 = vpop.xlane.xlu1 %835 }
 0x37f   : > { %v840_v36 = vsub.f32 %v831_v25, %v836_v35 }
 0x381   : > { %v842_v37 = vmul.f32 1.442695, %v840_v36 }
 0x382   : > { %v839_v38 = vpop.xlane.xlu1 %838 }
 0x383   : > { %2054 = vpow2.f32 %v842_v37  ;;  %v841_v39 = vsub.f32 %v832_v33, %v839_v38 }
 0x385   : > { %v844_v40 = vmul.f32 1.442695, %v841_v39 }
 0x386   : > { %v865_v41 = vpop.permute.xlu1 %864 }
 0x387   : > { %2056 = vpow2.f32 %v844_v40  ;;  %v871_v42 = vsel %vm869_vm4, %v865_v41, 0 }
 0x388   : > { %1865 = vmatpush3.bf16.msra.mxu1 %v871_v42 }
 0x389   : > { %1876 = vmatprep.subr.bf16.mxu1 %v2361_v1 }
 0x38a   : > { %v914_v43 = vpop.permute.xlu1 %913 }
 0x38b   : > { %v919_v44 = vsel %vm869_vm4, %v914_v43, 0 }
 0x38c   : > { %1871 = vmatpush3.bf16.msra.mxu0 %v919_v44 }
 0x38d   : > { %v2055_v45 = vpop.eup %2054  ;;  %1882 = vmatprep.subr.bf16.mxu0 %v2361_v1 }
 0x38e   : > { %v846_v46 = vsel %vm833_vm3, %v2055_v45, 0.0  ;;  %v966_v49 = vpop.permute.xlu1 %965 }
 0x38f   : > { %847 = vadd.xlane.f32.xlu0 %v846_v46  ;;  %v971_v59 = vsel %vm721_vm2, %v966_v49, 0 }
 0x391   : > { %v2057_v47 = vpop.eup %2056 }
 0x392   : > { %v849_v48 = vsel %vm833_vm3, %v2057_v47, 0.0 }
 0x393   : > { %850 = vadd.xlane.f32.xlu1 %v849_v48 }
 0x3a4   : > { %1015 = vrot.lane.b32.xlu1 %v2734_v14, %s2365_s16  ;;  %s2369_s16 = smov [#allocation15]  }
 0x3a5   : > { %963 = vrot.lane.b32.xlu0 %v2731_v11, %s2366_s12 }
 0x3a8   : > { %1013 = vrot.lane.b32.xlu1 %v2734_v14, %s2366_s12  ;;  %s2243_s12 = sshll.u32 %s2369_s16, 4  ;;  %s2244_s12 = int_to_ptr.vmem [resolvable:$false] %s2243_s12 }
 0x41c   : > { %v848_v50 = vpop.xlane.xlu0 %847 }
 0x41d   : > { %2058 = vrcp.f32 %v848_v50 }
 0x420   : > { %v851_v51 = vpop.xlane.xlu1 %850  ;;  %v964_v0 = vpop.permute.xlu0 %963 }
 0x421   : > { %2060 = vrcp.f32 %v851_v51 }
 0x424   : > { %v1016_v61 = vpop.permute.xlu1 %1015 }
 0x425   : > { %v1021_v63 = vsel %vm721_vm2, %v1016_v61, 0 }
 0x427   : > { %v2059_v52 = vpop.eup %2058 }
 0x428   : > { %v854_v54 = vmul.f32 %v2059_v52, %v2055_v45  ;;  %v1014_v2 = vpop.permute.xlu1 %1013  ;;  %v1090_v45 = vstv %s1778_s10  ;;  %v2046_v52 = vld [vmem:[#allocation8] sm:$0xff]  }
 0x42a   : > { %v858_v55 = vmul.f32 %v857_v53, %v854_v54 }
 0x42b   : > { %v2061_v56 = vpop.eup %2060 }
 0x42c   : > { %860 = vst.msk [vmem:[%s2772_s13] sm:$0xff] %vm833_vm3, %v858_v55  ;;  %v855_v57 = vmul.f32 %v2061_v56, %v2057_v47  ;;  %v862_v58 = vpack.c.bf16 %v858_v55, %v858_v55 }
 0x42e   : > { %v859_v60 = vmul.f32 %v857_v53, %v855_v57  ;;  %1867 = vmatmul.mubr.msk.bf16.vlgmr.msra.gmra.mrb[4].mxu1 %vm833_vm3, %v862_v58  ;;  %v2047_v53 = vld [vmem:[#allocation8 + $0x8] sm:$0xff]  }
 0x42f   : > { %1877 = vmatpush3.bf16.xpose.msra.mxu1 %v971_v59  ;;  %1878 = vmatprep.mubr.msk.bf16.mxu1 %vm2362_vm0, %v2361_v1 }
 0x430   : > { %861 = vst.msk [vmem:[%s2772_s13 + $0x10] sm:$0xff] %vm833_vm3, %v859_v60  ;;  %v863_v62 = vpack.c.bf16 %v859_v60, %v859_v60  ;;  %1888 = vmatprep.subr.bf16.mxu1 %v2361_v1 }
 0x432   : > { %1873 = vmatmul.mubr.msk.bf16.vlgmr.msra.gmra.mrb[8].mxu0 %vm833_vm3, %v863_v62 }
 0x433   : > { %1883 = vmatpush3.bf16.xpose.msra.mxu0 %v1021_v63  ;;  %1884 = vmatprep.mubr.msk.bf16.mxu0 %vm2362_vm0, %v2361_v1 }
 0x434   : > { %1894 = vmatprep.subr.bf16.mxu0 %v2361_v1 }
 0x436   : > { %1879 = vmatmul.mubr.msk.bf16.vlgmr.msra.gmra.mrb[8].mxu1 %vm721_vm2, %v964_v0 }
 0x437   : > { %1890 = vmatprep.mubr.msk.bf16.mxu1 %vm2362_vm0, %v2361_v1 }
 0x43a   : > { %1885 = vmatmul.mubr.msk.bf16.vlgmr.msra.gmra.mrb[12].mxu0 %vm721_vm2, %v1014_v2 }
 0x43b   : > { %1896 = vmatprep.mubr.msk.bf16.mxu0 %vm2362_vm0, %v2361_v1 }
 0x501   : > { %v907_v5 = vpop.f32.mrb[4].mxu1 }
 0x502   : > { %961 = vst.msk [vmem:[#allocation2] sm:$0xff] %vm721_vm2, %v907_v5  ;;  %v1868_v6 = vpop.f32.mrb[5].mxu1 }
 0x503   : > { %v910_v7 = vpop.f32.mrb[6].mxu1  ;;  %v1783_v6 = vld [vmem:[#allocation10] ss:$0 sm:$0xff] }
 0x504   : > { %v1869_v8 = vpop.f32.mrb[7].mxu1 }
 0x505   : > { %v955_v9 = vpop.f32.mrb[8].mxu0 }
 0x506   : > { %962 = vst.msk [vmem:[#allocation2 + $0x8] sm:$0xff] %vm721_vm2, %v955_v9  ;;  %v1874_v10 = vpop.f32.mrb[9].mxu0 }
 0x507   : > { %v958_v12 = vpop.f32.mrb[10].mxu0 }
 0x508   : > { %v1875_v13 = vpop.f32.mrb[11].mxu0 }
 0x509   : > { %v1007_v15 = vpop.f32.mrb[8].mxu1 }
 0x50a   : > { %v1063_v16 = vmul.f32 0.25, %v1007_v15  ;;  %v1880_v17 = vpop.f32.mrb[9].mxu1 }
 0x50b   : > { %v1010_v18 = vpop.f32.mrb[10].mxu1 }
 0x50c   : > { %v1881_v19 = vpop.f32.mrb[11].mxu1  ;;  %v1065_v21 = vadd.f32 %v2750_v20, %v1063_v16 }
 0x50d   : > { %v1057_v22 = vpop.f32.mrb[12].mxu0 }
 0x50e   : > { %v1064_v23 = vmul.f32 0.25, %v1057_v22  ;;  %v1886_v24 = vpop.f32.mrb[13].mxu0  ;;  %v1067_v25 = vsel %vm833_vm3, %v1065_v21, -inf }
 0x50f   : > { %1068 = vmax.xlane.f32.xlu1 %v1067_v25  ;;  %v1060_v26 = vpop.f32.mrb[14].mxu0 }
 0x510   : > { %v1887_v28 = vpop.f32.mrb[15].mxu0  ;;  %v1066_v29 = vadd.f32 %v2754_v27, %v1064_v23 }
 0x512   : > { %v1070_v30 = vsel %vm833_vm3, %v1066_v29, -inf }
 0x513   : > { %1071 = vmax.xlane.f32.xlu0 %v1070_v30  ;;  %v2049_v30 = vld [vmem:[%s2969_s9 + $0x8] sm:$0xff]  }
 0x529   : > { %1146 = vrot.lane.b32.xlu0 %v2734_v14, %s2367_s2 }
 0x59c   : > { %v1069_v31 = vpop.xlane.xlu1 %1068 }
 0x59d   : > { %v1073_v32 = vsub.f32 %v1065_v21, %v1069_v31 }
 0x59f   : > { %v1075_v33 = vmul.f32 1.442695, %v1073_v32 }
 0x5a0   : > { %v1072_v20 = vpop.xlane.xlu0 %1071 }
 0x5a1   : > { %2062 = vpow2.f32 %v1075_v33  ;;  %v1074_v34 = vsub.f32 %v1066_v29, %v1072_v20 }
 0x5a3   : > { %v1077_v35 = vmul.f32 1.442695, %v1074_v34 }
 0x5a4   : > { %v1147_v36 = vpop.permute.xlu0 %1146 }
 0x5a5   : > { %2064 = vpow2.f32 %v1077_v35  ;;  %v1152_v37 = vsel %vm869_vm4, %v1147_v36, 0 }
 0x5a6   : > { %1895 = vmatpush3.bf16.msra.mxu0 %v1152_v37 }
 0x5a7   : > { %1908 = vmatprep.subr.bf16.mxu0 %v2361_v1 }
 0x5ab   : > { %v2063_v27 = vpop.eup %2062 }
 0x5ac   : > { %v1079_v38 = vsel %vm833_vm3, %v2063_v27, 0.0 }
 0x5ad   : > { %1080 = vadd.xlane.f32.xlu1 %v1079_v38 }
 0x5af   : > { %v2065_v39 = vpop.eup %2064 }
 0x5b0   : > { %v1082_v14 = vsel %vm833_vm3, %v2065_v39, 0.0 }
 0x5b1   : > { %1083 = vadd.xlane.f32.xlu1 %v1082_v14 }
 0x5c2   : > { %1098 = vrot.lane.b32.xlu1 %v2731_v11, %s2367_s2  ;;  %s1577_s2 = sshll.u32 %s2772_s13, 4  ;;  %s2869_s2 = int_to_ptr.vmem [resolvable:$true] %s1577_s2 }
 0x5c3   : > { %p2246_p3 = scmp.lt.s32.totalorder %s2869_s2, %s2244_s12 }
 0x63a   : > { %v1081_v40 = vpop.xlane.xlu1 %1080 }
 0x63b   : > { %2066 = vrcp.f32 %v1081_v40  ;;  %v1788_v40 = vld [vmem:[#allocation13] ss:$0 sm:$0xff] }
 0x63e   : > { %v1084_v41 = vpop.xlane.xlu1 %1083 }
 0x63f   : > { %2068 = vrcp.f32 %v1084_v41 }
 0x642   : > { %v1099_v42 = vpop.permute.xlu1 %1098 }
 0x643   : > { %v1104_v43 = vsel %vm869_vm4, %v1099_v42, 0 }
 0x644   : > { %1889 = vmatpush3.bf16.msra.mxu1 %v1104_v43 }
 0x645   : > { %v2067_v44 = vpop.eup %2066  ;;  %1900 = vmatprep.subr.bf16.mxu1 %v2361_v1 }
 0x646   : > { %v1087_v46 = vmul.f32 %v2067_v44, %v2063_v27  ;;  %v1787_v27 = vld [vmem:[#allocation11] ss:$0 sm:$0xff] }
 0x648   : > { %v1091_v47 = vmul.f32 %v1090_v45, %v1087_v46  ;;  %v2051_v46 = vld [vmem:[%s2971_s11 + $0x8] sm:$0xff]  }
 0x649   : > { %v2069_v48 = vpop.eup %2068 }
 0x64a   : > { %1779 = vst.msk [vmem:[%s2772_s13 + $0x8] sm:$0xff] %vm833_vm3, %v1091_v47  ;;  %v1088_v11 = vmul.f32 %v2069_v48, %v2065_v39  ;;  %v1096_v49 = vpack.c.bf16 %v1091_v47, %v1091_v47  ;;  %v2052_v47 = vld [vmem:[%s2971_s11 + $0x10] sm:$0xff]   ;;  %v2053_v48 = vld [vmem:[%s2971_s11 + $0x18] sm:$0xff]  }
 0x64c   : > { %v1092_v50 = vmul.f32 %v1090_v45, %v1088_v11  ;;  %1891 = vmatmul.mubr.msk.bf16.vlgmr.msra.gmra.mrb[12].mxu1 %vm833_vm3, %v1096_v49  ;;  %v2050_v45 = vld [vmem:[%s2971_s11] sm:$0xff]  }
 0x64d   : > { %1904 = vmatprep.mubr.msk.bf16.mxu1 %vm2362_vm0, %v2361_v1  ;;  %1901 = vmatpush3.bf16.msra.mxu1 %v2046_v52  ;;  %v1789_v11 = vld [vmem:[%s3009_s15] ss:$0 sm:$0xff]  ;;  %s2239_s15 = scalar_lea.vmem %s2869_s2, 512 }
 0x64e   : > { %1780 = vst.msk [vmem:[%s2772_s13 + $0x18] sm:$0xff] %vm833_vm3, %v1092_v50  ;;  %v1097_v51 = vpack.c.bf16 %v1092_v50, %v1092_v50  ;;  %1902 = vmatprep.subr.bf16.mxu1 %v2361_v1  ;;  %p2240_p0 = scmp.ne.s32.totalorder %s2869_s2, %s2239_s15  ;;  %s2245_s13 = scalar_lea.vmem %s2244_s12, 1024 }
 0x64f   : > { %p2247_p10 = scmp.lt.s32.totalorder %s2245_s13, %s2239_s15 }
 0x650   : > { %1897 = vmatmul.mubr.msk.bf16.vlgmr.msra.gmra.mrb[16].mxu0 %vm833_vm3, %v1097_v51  ;;  %p2241_p9 = pnand %p2240_p0, %p3012_p7 }
 0x651   : > { %1912 = vmatprep.mubr.msk.bf16.mxu0 %vm2362_vm0, %v2361_v1  ;;  %1903 = vmatpush3.bf16.msra.mxu1 %v2047_v53  ;;  %p2248_p8 = por %p2247_p10, %p2246_p3 }
 0x652   : > { %1916 = vmatprep.subr.bf16.mxu1 %v2361_v1  ;;  %p2242_p1 = pneg %p2241_p9 }
 0x654   : > { %p2249_p6 = pnand %p2248_p8, %p2242_p1 }
 0x71f   : > { %v1140_v54 = vpop.f32.mrb[12].mxu1 }
 0x720   : > { %1196 = vrot.lane.b32.xlu1 %v1140_v54, %s2368_s17  ;;  %v1892_v55 = vpop.f32.mrb[13].mxu1 }
 0x721   : > { %v1143_v56 = vpop.f32.mrb[14].mxu1 }
 0x722   : > { %v1893_v57 = vpop.f32.mrb[15].mxu1 }
 0x723   : > { %v1188_v58 = vpop.f32.mrb[16].mxu0 }
 0x724   : > { %1198 = vrot.lane.b32.xlu1 %v1188_v58, %s2368_s17  ;;  %v1898_v59 = vpop.f32.mrb[17].mxu0 }
 0x725   : > { %v1191_v60 = vpop.f32.mrb[18].mxu0 }
 0x726   : > { %v1899_v61 = vpop.f32.mrb[19].mxu0 }
 0x792   : > { %v1197_v62 = vpop.permute.xlu1 %1196 }
 0x793   : > { %1203 = vst.msk [vmem:[#allocation2] sm:$0xff] %vm1202_vm5, %v1197_v62 }
 0x796   : > { %v1199_v63 = vpop.permute.xlu1 %1198 }
 0x797   : > { %1204 = vst.msk [vmem:[#allocation2 + $0x8] sm:$0xff] %vm1202_vm5, %v1199_v63 }
 0x79a   : > { %v1205_v0 = vld [vmem:[#allocation2] sm:$0xff] }
 0x79e   : > { %v1206_v2 = vld [vmem:[#allocation2 + $0x8] sm:$0xff] }
 0x79f   : > { %v1207_v5 = vpack.c.bf16 %v1206_v2, %v1205_v0 }
 0x7a1   : > { %1905 = vmatmul.mubr.msk.bf16.vlgmr.msra.gmra.mrb[16].mxu1 %vm671_vm1, %v1207_v5 }
 0x7a2   : > { %1924 = vmatprep.mubr.msk.bf16.mxu1 %vm2362_vm0, %v2361_v1  ;;  %1917 = vmatpush3.bf16.msra.mxu1 %v2050_v45 }
 0x7a3   : > { %1918 = vmatprep.subr.bf16.mxu1 %v2361_v1 }
 0x7a6   : > { %1919 = vmatpush3.bf16.msra.mxu1 %v2051_v46 }
 0x7a7   : > { %1920 = vmatprep.subr.bf16.mxu1 %v2361_v1 }
 0x7aa   : > { %1921 = vmatpush3.bf16.msra.mxu1 %v2052_v47 }
 0x7ab   : > { %1922 = vmatprep.subr.bf16.mxu1 %v2361_v1 }
 0x7ae   : > { %1923 = vmatpush3.bf16.msra.mxu1 %v2053_v48 }
 0x874   : > { %v1268_v7 = vpop.f32.mrb[16].mxu1 }
 0x875   : > { %v1269_v8 = vadd.f32 %v1783_v6, %v1268_v7  ;;  %v1906_v9 = vpop.f32.mrb[17].mxu1 }
 0x876   : > { %v1271_v10 = vpop.f32.mrb[18].mxu1 }
 0x877   : > { %v1272_v12 = vadd.f32 %v1783_v6, %v1271_v10  ;;  %v1907_v13 = vpop.f32.mrb[19].mxu1  ;;  %v1275_v15 = vadd.f32 %v1269_v8, %v2719_v3 }
 0x878   : > { %v1793_v13 = vld [vmem:[%s3010_s0] ss:$0 sm:$0xff] }
 0x879   : > { %v1279_v16 = vsel %vm671_vm1, %v1275_v15, 0.0  ;;  %v1276_v17 = vadd.f32 %v1272_v12, %v2721_v4  ;;  %v2048_v4 = vld [vmem:[%s2969_s9] sm:$0xff]  }
 0x87a   : > { %1280 = vadd.xlane.f32.xlu0 %v1279_v16  ;;  %1909 = vmatpush3.bf16.msra.mxu0 %v2048_v4 }
 0x87b   : > { %v1282_v18 = vsel %vm671_vm1, %v1276_v17, 0.0  ;;  %1910 = vmatprep.subr.bf16.mxu0 %v2361_v1 }
 0x87c   : > { %1283 = vadd.xlane.f32.xlu1 %v1282_v18 }
 0x87e   : > { %1911 = vmatpush3.bf16.msra.mxu0 %v2049_v30 }
 0x907   : > { %v1281_v19 = vpop.xlane.xlu0 %1280 }
 0x908   : > { %v1286_v21 = vmul.f32 0.03125, %v1281_v19 }
 0x909   : > { %v1284_v22 = vpop.xlane.xlu1 %1283 }
 0x90a   : > { %v1288_v23 = vsub.f32 %v1275_v15, %v1286_v21  ;;  %v1287_v24 = vmul.f32 0.03125, %v1284_v22 }
 0x90c   : > { %v1289_v25 = vsub.f32 %v1276_v17, %v1287_v24  ;;  %v1290_v26 = vmul.f32 %v1288_v23, %v1288_v23 }
 0x90e   : > { %v1292_v28 = vsel %vm671_vm1, %v1290_v26, 0.0  ;;  %v1291_v29 = vmul.f32 %v1289_v25, %v1289_v25 }
 0x90f   : > { %1293 = vadd.xlane.f32.xlu0 %v1292_v28 }
 0x910   : > { %v1295_v3 = vsel %vm671_vm1, %v1291_v29, 0.0 }
 0x913   : > { %1296 = vadd.xlane.f32.xlu0 %v1295_v3 }
 0x99c   : > { %v1294_v31 = vpop.xlane.xlu0 %1293 }
 0x99d   : > { %v1298_v32 = vmul.f32 0.03125, %v1294_v31 }
 0x99f   : > { %v1300_v33 = vadd.f32 1e-12, %v1298_v32 }
 0x9a0   : > { %v1297_v20 = vpop.xlane.xlu0 %1296 }
 0x9a1   : > { %2070 = vrsqrt.f32 %v1300_v33  ;;  %v1299_v34 = vmul.f32 0.03125, %v1297_v20 }
 0x9a3   : > { %v1301_v35 = vadd.f32 1e-12, %v1299_v34 }
 0x9a5   : > { %2072 = vrsqrt.f32 %v1301_v35 }
 0x9ab   : > { %v2071_v36 = vpop.eup %2070 }
 0x9ac   : > { %v1304_v37 = vmul.f32 %v2071_v36, %v1288_v23 }
 0x9ae   : > { %v1312_v39 = vmul.f32 %v1787_v27, %v1304_v37 }
 0x9af   : > { %v2073_v38 = vpop.eup %2072 }
 0x9b0   : > { %v1305_v14 = vmul.f32 %v2073_v38, %v1289_v25  ;;  %v1320_v42 = vadd.f32 %v1788_v40, %v1312_v39 }
 0x9b2   : > { %v1313_v41 = vmul.f32 %v1787_v27, %v1305_v14 }
 0x9b4   : > { %v1321_v43 = vadd.f32 %v1788_v40, %v1313_v41 }
 0x9b6   : > { %v1322_v44 = vpack.c.bf16 %v1321_v43, %v1320_v42 }
 0x9b8   : > { %1913 = vmatmul.mubr.msk.bf16.vlgmr.msra.gmra.mrb[20].mxu0 %vm671_vm1, %v1322_v44 }
 0xa8b   : > { %v1383_v49 = vpop.f32.mrb[20].mxu0 }
 0xa8c   : > { %v1384_v50 = vadd.f32 %v1789_v11, %v1383_v49  ;;  %v1914_v51 = vpop.f32.mrb[21].mxu0 }
 0xa8d   : > { %v1386_v52 = vpop.f32.mrb[22].mxu0 }
 0xa8e   : > { %v1392_v53 = vmul.f32 0.044715, %v1384_v50  ;;  %v1387_v54 = vadd.f32 %v1789_v11, %v1386_v52  ;;  %v1915_v55 = vpop.f32.mrb[23].mxu0  ;;  %v1390_v6 = vmul.f32 0.5, %v1384_v50 }
 0xa90   : > { %v1394_v56 = vmul.f32 %v1392_v53, %v1384_v50  ;;  %v1393_v57 = vmul.f32 0.044715, %v1387_v54  ;;  %v1391_v7 = vmul.f32 0.5, %v1387_v54 }
 0xa92   : > { %v1396_v58 = vmul.f32 %v1394_v56, %v1384_v50  ;;  %v1395_v59 = vmul.f32 %v1393_v57, %v1387_v54 }
 0xa94   : > { %v1398_v60 = vadd.f32 %v1396_v58, %v1384_v50  ;;  %v1397_v61 = vmul.f32 %v1395_v59, %v1387_v54 }
 0xa96   : > { %v1400_v62 = vmul.f32 0.7978846, %v1398_v60  ;;  %v1399_v1 = vadd.f32 %v1397_v61, %v1387_v54 }
 0xa98   : > { %2074 = vtanh.f32 %v1400_v62  ;;  %v1401_v63 = vmul.f32 0.7978846, %v1399_v1 }
 0xa9a   : > { %2076 = vtanh.f32 %v1401_v63 }
 0xaa2   : > { %v2075_v0 = vpop.eup %2074 }
 0xaa3   : > { %v1404_v2 = vadd.f32 1.0, %v2075_v0 }
 0xaa4   : > { %v2077_v5 = vpop.eup %2076 }
 0xaa5   : > { %v1405_v8 = vadd.f32 1.0, %v2077_v5  ;;  %v1406_v9 = vmul.f32 %v1404_v2, %v1390_v6 }
 0xaa7   : > { %v1407_v10 = vmul.f32 %v1405_v8, %v1391_v7 }
 0xaa9   : > { %v1408_v12 = vpack.c.bf16 %v1407_v10, %v1406_v9 }
 0xaab   : > { %1925 = vmatmul.mubr.msk.bf16.vlgmr.msra.gmra.mrb[20].mxu1 %vm1448_vm6, %v1408_v12 }
 0xb7e   : > { %v1486_v15 = vpop.f32.mrb[20].mxu1 }
 0xb7f   : > { %v1487_v16 = vadd.f32 %v1793_v13, %v1486_v15  ;;  %v1926_v17 = vpop.f32.mrb[21].mxu1 }
 0xb80   : > { %v1489_v18 = vpop.f32.mrb[22].mxu1 }
 0xb81   : > { %v1490_v19 = vadd.f32 %v1793_v13, %v1489_v18  ;;  %v1927_v21 = vpop.f32.mrb[23].mxu1  ;;  %v1493_v22 = vadd.f32 %v1487_v16, %v1320_v42 }
 0xb83   : > { %v1497_v23 = vsel %vm671_vm1, %v1493_v22, 0.0  ;;  %v1494_v24 = vadd.f32 %v1490_v19, %v1321_v43 }
 0xb84   : > { %1498 = vadd.xlane.f32.xlu1 %v1497_v23 }
 0xb85   : > { %v1500_v25 = vsel %vm671_vm1, %v1494_v24, 0.0 }
 0xb86   : > { %1501 = vadd.xlane.f32.xlu0 %v1500_v25 }
 0xc11   : > { %v1499_v26 = vpop.xlane.xlu1 %1498 }
 0xc12   : > { %v1503_v28 = vmul.f32 0.03125, %v1499_v26 }
 0xc13   : > { %v1502_v29 = vpop.xlane.xlu0 %1501 }
 0xc14   : > { %v1505_v3 = vsub.f32 %v1493_v22, %v1503_v28  ;;  %v1504_v4 = vmul.f32 0.03125, %v1502_v29 }
 0xc16   : > { %v1506_v30 = vsub.f32 %v1494_v24, %v1504_v4  ;;  %v1507_v31 = vmul.f32 %v1505_v3, %v1505_v3 }
 0xc18   : > { %v1509_v32 = vsel %vm671_vm1, %v1507_v31, 0.0  ;;  %v1508_v33 = vmul.f32 %v1506_v30, %v1506_v30 }
 0xc19   : > { %1510 = vadd.xlane.f32.xlu1 %v1509_v32 }
 0xc1a   : > { %v1512_v20 = vsel %vm671_vm1, %v1508_v33, 0.0 }
 0xc1b   : > { %1513 = vadd.xlane.f32.xlu0 %v1512_v20 }
 0xc1c   : > { %2252 = shalt.err (!%p2249_p6)
}
 0xc1d   : > { %s2253_s0 = scalar_lea.hbm %s2867_s28, 512  ;;  %s2257_s17 = scalar_lea.hbm %s3011_s26, 1024 }
 0xc1e   : > { %p2254_p2 = scmp.ne.s32.totalorder %s2867_s28, %s2253_s0  ;;  %p2258_p11 = scmp.lt.u32.totalorder %s2867_s28, %s3011_s26 }
 0xc1f   : > { %p2259_p13 = scmp.lt.u32.totalorder %s2257_s17, %s2253_s0  ;;  %p2261_p0 = scmp.lt.u32.totalorder %s2253_s0, %s2867_s28 }
 0xc20   : > { %p2255_p5 = pnand %p2254_p2, %p3012_p7 }
 0xc21   : > { %p2260_p12 = por %p2259_p13, %p2258_p11 }
 0xc22   : > { %p2256_p4 = pneg %p2255_p5 }
 0xc23   : > { %p2262_p9 = por %p2261_p0, %p2260_p12 }
 0xc25   : > { %p2263_p1 = pnand %p2262_p9, %p2256_p4 }
 0xc27   : > { %2266 = shalt.err (!%p2263_p1)
}
 0xc28   : > { %s2982_s15 = smov 128   ;;  %s2983_s13 = smov 8  }
 0xc29   : > { %1951 = dma.vmem_to_hbm [thread:$0]  (%p3012_p7), %s2869_s2, 512, %s2867_s28, %s1547_s29, %s2982_s15, %s2982_s15, %s2983_s13  }
 0xc2a   : > { %s1762_s0 = sshll.u32 %s2679_s18, 4  ;;  %s3013_s17 = sld [smem:[#allocation27_spill]] }
 0xc2b   : > { %s3014_s28 = sld [smem:[#allocation28_spill]]  ;;  %s1811_s29 = sshll.u32 %s2479_s27, 8 }
 0xc2c   : > { %s625_s12 = scalar_lea.vmem [#allocation14], %s1762_s0  ;;  %s1542_s27 = scalar_lea.sflag [#allocation5], %s2679_s18 }
 0xc2d   : > { %s1560_s15 = sshll.u32 %s625_s12, 4  ;;  %s2372_s16 = smov [#allocation14]   ;;  %s2912_s15 = int_to_ptr.vmem [resolvable:$true] %s1560_s15 }
 0xc2e   : > { %s2267_s0 = scalar_lea.vmem %s2912_s15, 256  ;;  %s2271_s2 = sshll.u32 %s2372_s16, 4  ;;  %s2272_s2 = int_to_ptr.vmem [resolvable:$false] %s2271_s2 }
 0xc2f   : > { %p2268_p3 = scmp.ne.s32.totalorder %s2912_s15, %s2267_s0  ;;  %p2274_p6 = scmp.lt.s32.totalorder %s2912_s15, %s2272_s2 }
 0xc30   : > { %v1799_v14 = vld [vmem:[%s3013_s17] ss:$0 sm:$0xff]  ;;  %s3015_s17 = sld [smem:[#allocation29_spill]] }
 0xc31   : > { %v1800_v42 = vld [vmem:[%s3014_s28] ss:$0 sm:$0xff]  ;;  %p2269_p10 = pnand %p2268_p3, %p3012_p7  ;;  %s2273_s28 = scalar_lea.vmem %s2272_s2, 512 }
 0xc32   : > { %p2275_p2 = scmp.lt.s32.totalorder %s2273_s28, %s2267_s0 }
 0xc33   : > { %p2270_p8 = pneg %p2269_p10 }
 0xc34   : > { %p2276_p5 = por %p2275_p2, %p2274_p6 }
 0xc36   : > { %s2910_s13 = scalar_lea.hbm %s3015_s17, %s1811_s29  ;;  %p2277_p4 = pnand %p2276_p5, %p2270_p8 }
 0xca6   : > { %v1511_v34 = vpop.xlane.xlu1 %1510 }
 0xca7   : > { %v1515_v35 = vmul.f32 0.03125, %v1511_v34 }
 0xca8   : > { %v1514_v36 = vpop.xlane.xlu0 %1513 }
 0xca9   : > { %v1517_v37 = vadd.f32 1e-12, %v1515_v35  ;;  %v1516_v27 = vmul.f32 0.03125, %v1514_v36 }
 0xcab   : > { %2078 = vrsqrt.f32 %v1517_v37  ;;  %v1518_v38 = vadd.f32 1e-12, %v1516_v27 }
 0xcad   : > { %2080 = vrsqrt.f32 %v1518_v38 }
 0xcb5   : > { %v2079_v39 = vpop.eup %2078 }
 0xcb6   : > { %v1521_v40 = vmul.f32 %v2079_v39, %v1505_v3 }
 0xcb7   : > { %v2081_v41 = vpop.eup %2080 }
 0xcb8   : > { %v1529_v43 = vmul.f32 %v1799_v14, %v1521_v40  ;;  %v1522_v44 = vmul.f32 %v2081_v41, %v1506_v30 }
 0xcba   : > { %v1537_v45 = vadd.f32 %v1800_v42, %v1529_v43  ;;  %v1530_v46 = vmul.f32 %v1799_v14, %v1522_v44 }
 0xcbc   : > { %v1538_v47 = vadd.f32 %v1800_v42, %v1530_v46  ;;  %1539 = vst.msk [vmem:[%s625_s12] sm:$0xff] %vm671_vm1, %v1537_v45 }
 0xcbe   : > { %1540 = vst.msk [vmem:[%s625_s12 + $0x8] sm:$0xff] %vm671_vm1, %v1538_v47 }
 0xcbf   : > { %2280 = shalt.err (!%p2277_p4)
}
 0xcc0   : > { %s2281_s29 = scalar_lea.hbm %s2910_s13, 256  ;;  %s2285_s10 = scalar_lea.hbm %s3015_s17, 512 }
 0xcc1   : > { %p2282_p11 = scmp.ne.s32.totalorder %s2910_s13, %s2281_s29  ;;  %p2286_p0 = scmp.lt.u32.totalorder %s2910_s13, %s3015_s17 }
 0xcc2   : > { %p2287_p9 = scmp.lt.u32.totalorder %s2285_s10, %s2281_s29  ;;  %p2289_p3 = scmp.lt.u32.totalorder %s2281_s29, %s2910_s13 }
 0xcc3   : > { %p2283_p13 = pnand %p2282_p11, %p3012_p7 }
 0xcc4   : > { %p2288_p1 = por %p2287_p9, %p2286_p0 }
 0xcc5   : > { %p2284_p12 = pneg %p2283_p13 }
 0xcc6   : > { %p2290_p10 = por %p2289_p3, %p2288_p1 }
 0xcc8   : > { %p2291_p8 = pnand %p2290_p10, %p2284_p12 }
 0xcca   : > { %2294 = shalt.err (!%p2291_p8)
}
 0xccb   : > { %s3016_s0 = smov 8   ;;  %s3017_s28 = smov 128  }
 0xccc   : > { %1950 = dma.vmem_to_hbm [thread:$0]  (%p3012_p7), %s2912_s15, 256, %s2910_s13, %s1542_s27, %s3017_s28, %s3017_s28, %s3016_s0  }
 0xccd PF: > { %s1592_s12 = sand.u32 1, %s2337_s21   ;;  %p3018_p6 = scmp.ne.s32.totalorder %s2999_s14, 0 }
 0xcce   : > { %p3019_p2 = scmp.ge.s32.totalorder %s2349_s24, 2  ;;  %s1593_s29 = scalar_lea.sflag [#allocation5], %s1592_s12 }
 0xcd0   : > { %p1975_p5 = pnand %p3019_p2, %p3018_p6 }
 0xcd2   : > { %2328 = dma.done.wait (!%p1975_p5), %s1593_s29, 256  }
 0xcd3   : > { %2330 = vsyncadd (!%p1975_p5), %s1593_s29, 4294967040  ;;  %s1602_s25 = scalar_lea.sflag [#allocation16], %s1592_s12 }
 0xcd4   : > { %2332 = dma.done.wait (!%p1975_p5), %s1602_s25, 512  }
 0xcd5   : > { %2334 = vsyncadd (!%p1975_p5), %s1602_s25, 4294966784  ;;  %p36_p7 = scmp.ge.s32.totalorder %s2606_s19, 4   ;;  %s3020_s21 = smov %s2341_s22 }
 0xcd6   : > { %s3021_s22 = smov %s2345_s23  ;;  %s3022_s23 = smov %s2618_s30 }
 0xcd7   : > { %s3023_s24 = smov %s2606_s19  ;;  %38 = sbr.rel (!%p36_p7) target bundleno = 19 (0x13), region = 167 }
 0xcde   :  { %1607 = vsyncpa [#allocation4], 1 }
 0xcdf   :  { %1609 = vsyncpa [#allocation4 + $0x1], 1 }
 0xce0   :  { %1610 = vsyncpa [#allocation9], 1 }
 0xce1   :  { %1611 = vsyncpa [#allocation12], 1 }
 0xce2   :  { %1612 = vsyncpa [#allocation5], 1 }
 0xce3   :  { %1614 = vsyncpa [#allocation5 + $0x1], 1 }
 0xce4   :  { %1615 = vsyncpa [#allocation16], 1 }
 0xce5   :  { %1617 = vsyncpa [#allocation16 + $0x1], 1 }
 0xce6   :  { %1618 = vsyncpa [#allocation6], 1 }
 0xce7   :  { %1620 = vsyncpa [#allocation6 + $0x1], 1 }

</bundles_post_ra>
